<compile_context>
chip_gen: v7x
topology: tpu7x:2x2x1
jax: 0.10.0
libtpu: 0.0.40
codegen_flags: <defaults>
</compile_context>

<pallas_src>
import functools

import jax
import jax.numpy as jnp
from jax import lax
from jax.experimental import pallas as pl
from jax.experimental.pallas import tpu as pltpu


# ---------------------------------------------------------------------------
# Pass 1: conv tile + per-tile BatchNorm partial statistics
# ---------------------------------------------------------------------------
def _conv_stats_kernel(x_ref, w_ref, conv_ref, stat_ref, acc_ref):
    """One (image, row-tile) grid step.

    x_ref:    [1, H+2p, W+2p, Cin]  padded plane of image n (VMEM-resident
                                    across the row-tile axis), compute dtype
    w_ref:    [KH, KW, Cin, Cout]   conv weights (HWIO), compute dtype
    conv_ref: [1, TH, W, Cout]      conv output tile, compute dtype
    stat_ref: [1, 1, 2, Cout]       f32 per-tile (sum, sum-of-squares)
    acc_ref:  [TH * W, Cout]        f32 VMEM accumulator scratch
    """
    t = pl.program_id(1)
    KH, KW, Cin, Cout = w_ref.shape
    TH = conv_ref.shape[1]
    W = conv_ref.shape[2]
    r0 = t * TH                      # first row (padded coords) of this tile

    first = True
    for kw in range(KW):
        # One kw-shifted window per kw, shared by the KH row taps.  Only the
        # W (sublane) axis is sliced off-alignment, and only KW times/tile.
        xw = x_ref[:, pl.ds(r0, TH + KH - 1), kw:kw + W, :]   # [1,TH+KH-1,W,Cin]
        for kh in range(KH):
            win = xw[:, kh:kh + TH]                            # [1, TH, W, Cin]
            # Contract Cin on the MXU (K = Cin, >=32 in real STDC configs).
            contrib = jnp.dot(win.reshape(TH * W, Cin), w_ref[kh, kw, :, :],
                              preferred_element_type=jnp.float32)
            if first:
                acc_ref[...] = contrib
                first = False
            else:
                acc_ref[...] += contrib

    acc = acc_ref[...]                                        # [TH*W, Cout] f32
    conv_ref[...] = acc.reshape(1, TH, W, Cout).astype(conv_ref.dtype)

    # Partial BN statistics for this tile (folded into global stats in JAX).
    s = jnp.sum(acc, axis=0, keepdims=True)                   # [1, Cout]
    ss = jnp.sum(acc * acc, axis=0, keepdims=True)            # [1, Cout]
    stat_ref[...] = jnp.concatenate([s, ss], axis=0).reshape(1, 1, 2, Cout)


# ---------------------------------------------------------------------------
# Pass 2: apply BatchNorm (precomputed scale/shift) + ReLU on a flat 2D view
# ---------------------------------------------------------------------------
def _bn_relu_kernel(y_ref, scale_ref, shift_ref, out_ref):
    y = y_ref[...].astype(jnp.float32)                        # [TR, Cout]
    out_ref[...] = jnp.maximum(y * scale_ref[...] + shift_ref[...], 0.0
                               ).astype(out_ref.dtype)


# ---------------------------------------------------------------------------
# NHWC core (no layout glue) — preferred entry point for NHWC pipelines.
# ---------------------------------------------------------------------------
def conv_bn_relu_nhwc(x_nhwc, w_hwio, gamma, beta, *, stride=1, eps=1e-5,
                      compute_dtype=jnp.bfloat16, row_tile=None,
                      bn_row_tile=None):
    if stride != 1:
        # TODO(synk): stride > 1 (used by some STDC blocks) not implemented.
        raise NotImplementedError("only stride=1 is supported")

    N, H, W, Cin = x_nhwc.shape
    KH, KW, _, Cout = w_hwio.shape
    ph, pw = KH // 2, KW // 2

    if row_tile is None:
        row_tile = H
        for cand in (64, 32, 16, 8):     # sized so tiles fit v7x VMEM budget
            if H % cand == 0:
                row_tile = cand
                break
    assert H % row_tile == 0, (H, row_tile)
    n_t = H // row_tile
    Hp, Wp = H + 2 * ph, W + 2 * pw

    # Halo padding + cast (XLA fuses pad/cast/transpose of the caller into one
    # copy; the kernel itself never re-pads or re-lays-out the activation).
    x_pad = jnp.pad(x_nhwc.astype(compute_dtype),
                    ((0, 0), (ph, ph), (pw, pw), (0, 0)))
    w = w_hwio.astype(compute_dtype)

    vmem_limit = 48 * 1024 * 1024     # fits v7x's 64 MiB physical VMEM
    itemsize = jnp.dtype(compute_dtype).itemsize
    flops1 = 2 * N * H * W * KH * KW * Cin * Cout
    bytes1 = (N * Hp * Wp * Cin * itemsize + KH * KW * Cin * Cout * itemsize
              + N * H * W * Cout * itemsize + N * n_t * 2 * Cout * 4)

    conv_out, tile_stats = pl.pallas_call(
        _conv_stats_kernel,
        grid=(N, n_t),
        in_specs=[
            # Full padded plane of image n; constant along the row-tile axis
            # so it is fetched from HBM only once per image.
            pl.BlockSpec((1, Hp, Wp, Cin), lambda n, t: (n, 0, 0, 0)),
            pl.BlockSpec((KH, KW, Cin, Cout), lambda n, t: (0, 0, 0, 0)),
        ],
        out_specs=(
            pl.BlockSpec((1, row_tile, W, Cout), lambda n, t: (n, t, 0, 0)),
            pl.BlockSpec((1, 1, 2, Cout), lambda n, t: (n, t, 0, 0)),
        ),
        out_shape=(
            jax.ShapeDtypeStruct((N, H, W, Cout), compute_dtype),
            jax.ShapeDtypeStruct((N, n_t, 2, Cout), jnp.float32),
        ),
        scratch_shapes=[pltpu.VMEM((row_tile * W, Cout), jnp.float32)],
        compiler_params=pltpu.CompilerParams(
            dimension_semantics=("parallel", "parallel"),
            vmem_limit_bytes=vmem_limit),
        cost_estimate=pl.CostEstimate(flops=flops1, transcendentals=0,
                                      bytes_accessed=bytes1),
    )(x_pad, w)

    # Fold the per-tile partial sums into global batch statistics (tiny JAX
    # ops on [2, Cout]).  Biased variance, eps=1e-5; running stats NOT updated.
    cnt = float(N * H * W)
    total = jnp.sum(tile_stats, axis=(0, 1))                  # [2, Cout] f32
    mean = total[0] / cnt
    var = jnp.maximum(total[1] / cnt - mean * mean, 0.0)      # E[x^2] - E[x]^2
    inv_std = lax.rsqrt(var + eps)
    g32 = gamma.astype(jnp.float32)
    scale = (g32 * inv_std).reshape(1, Cout)
    shift = (beta.astype(jnp.float32) - mean * g32 * inv_std).reshape(1, Cout)

    # ----- Pass 2 on the flattened lane-dense [N*H*W, Cout] view -----------
    R = N * H * W
    y2 = conv_out.reshape(R, Cout)     # contiguous NHWC -> free reshape
    if bn_row_tile is None:
        bn_row_tile = R
        per_row = Cout * (itemsize + 4) * 2   # double-buffered in + out
        for cand in (8192, 4096, 2048, 1024, 512, 256, 128, 64, 32, 16, 8):
            if R % cand == 0 and cand * per_row <= 16 * 1024 * 1024:
                bn_row_tile = cand
                break
    assert R % bn_row_tile == 0, (R, bn_row_tile)
    n_r = R // bn_row_tile

    bytes2 = R * Cout * itemsize + R * Cout * 4 + 2 * 2 * Cout * 4
    out_flat = pl.pallas_call(
        _bn_relu_kernel,
        grid=(n_r,),
        in_specs=[
            pl.BlockSpec((bn_row_tile, Cout), lambda i: (i, 0)),
            pl.BlockSpec((1, Cout), lambda i: (0, 0)),
            pl.BlockSpec((1, Cout), lambda i: (0, 0)),
        ],
        out_specs=pl.BlockSpec((bn_row_tile, Cout), lambda i: (i, 0)),
        out_shape=jax.ShapeDtypeStruct((R, Cout), jnp.float32),
        compiler_params=pltpu.CompilerParams(
            dimension_semantics=("parallel",),
            vmem_limit_bytes=vmem_limit),
        cost_estimate=pl.CostEstimate(flops=2 * R * Cout, transcendentals=0,
                                      bytes_accessed=bytes2),
    )(y2, scale, shift)
    return out_flat.reshape(N, H, W, Cout)


# ---------------------------------------------------------------------------
# PyTorch-layout wrapper (NCHW in / NCHW out, OIHW weights).
# ---------------------------------------------------------------------------
def conv_bn_relu(x_nchw, weight_oihw, gamma, beta, *, stride=1, eps=1e-5,
                 compute_dtype=jnp.bfloat16, row_tile=None, bn_row_tile=None):
    # Layout glue only.  Callers that already keep activations in NHWC should
    # call conv_bn_relu_nhwc directly and skip both full-array transposes.
    x_nhwc = jnp.transpose(x_nchw, (0, 2, 3, 1))
    w_hwio = jnp.transpose(weight_oihw, (2, 3, 1, 0))
    out_nhwc = conv_bn_relu_nhwc(x_nhwc, w_hwio, gamma, beta, stride=stride,
                                 eps=eps, compute_dtype=compute_dtype,
                                 row_tile=row_tile, bn_row_tile=bn_row_tile)
    return jnp.transpose(out_nhwc, (0, 3, 1, 2))


# ---------------------------------------------------------------------------
# Pure-JAX reference (same semantics as the PyTorch module in train mode).
# ---------------------------------------------------------------------------
def _reference(x_nchw, weight_oihw, gamma, beta, eps=1e-5):
    conv = lax.conv_general_dilated(
        x_nchw, weight_oihw, window_strides=(1, 1), padding="SAME",
        dimension_numbers=("NCHW", "OIHW", "NCHW"))
    mean = jnp.mean(conv, axis=(0, 2, 3), keepdims=True)
    var = jnp.mean((conv - mean) ** 2, axis=(0, 2, 3), keepdims=True)
    y = ((conv - mean) * lax.rsqrt(var + eps)
         * gamma.reshape(1, -1, 1, 1) + beta.reshape(1, -1, 1, 1))
    return jnp.maximum(y, 0.0)


if __name__ == "__main__":
    # ConvBNRelu(in_planes=4, out_planes=8, kernel=3, stride=1)
    in_planes, out_planes, kernel = 4, 8, 3
    N, H, W = 2, 16, 16

    key = jax.random.PRNGKey(0)
    kx, kw_, kg, kb = jax.random.split(key, 4)

    x = jax.random.normal(kx, (N, in_planes, H, W), dtype=jnp.float32)
    fan_in = in_planes * kernel * kernel
    conv_w = jax.random.normal(kw_, (out_planes, in_planes, kernel, kernel),
                               dtype=jnp.float32) * (1.0 / fan_in ** 0.5)
    bn_gamma = 1.0 + 0.1 * jax.random.normal(kg, (out_planes,), dtype=jnp.float32)
    bn_beta = 0.1 * jax.random.normal(kb, (out_planes,), dtype=jnp.float32)

    # Default (bf16 MXU) path; small tiles so the smoke test exercises both
    # grids (conv grid = (2, 2), bn grid = (4,)).
    fn_bf16 = jax.jit(functools.partial(conv_bn_relu, row_tile=8,
                                        bn_row_tile=128))
    out = jax.block_until_ready(fn_bf16(x, conv_w, bn_gamma, bn_beta))

    assert out.shape == (N, out_planes, H, W), out.shape
    assert bool(jnp.all(jnp.isfinite(out)))
    assert bool(jnp.all(out >= 0.0))   # ReLU post-condition

    # Exact-path numerical check against the pure-JAX reference.
    fn_f32 = jax.jit(functools.partial(conv_bn_relu, row_tile=8,
                                       bn_row_tile=128,
                                       compute_dtype=jnp.float32))
    out_f32 = jax.block_until_ready(fn_f32(x, conv_w, bn_gamma, bn_beta))
    ref = jax.block_until_ready(_reference(x, conv_w, bn_gamma, bn_beta))
    assert bool(jnp.allclose(out_f32, ref, atol=1e-3, rtol=1e-3)), (
        float(jnp.max(jnp.abs(out_f32 - ref))))

    print("KERNEL_OK")
</pallas_src>

<mosaic_0001>
module attributes {stable_mosaic.version = 11 : i64} {
  func.func @_conv_stats_kernel(%arg0: i32, %arg1: i32, %arg2: memref<1x18x18x4xbf16, #tpu.memory_space<vmem>>, %arg3: memref<3x3x4x8xbf16, #tpu.memory_space<vmem>>, %arg4: memref<1x8x16x8xbf16, #tpu.memory_space<vmem>>, %arg5: memref<1x1x2x8xf32, #tpu.memory_space<vmem>>, %arg6: memref<128x8xf32, #tpu.memory_space<vmem>>) attributes {dimension_semantics = [#tpu.dimension_semantics<parallel>, #tpu.dimension_semantics<parallel>], iteration_bounds = array<i64: 2, 2>, scalar_prefetch = 0 : i64, scratch_operands = 1 : i64, tpu.core_type = #tpu.core_type<tc>, window_params = [{transform_indices = @transform_0, window_bounds = array<i64: 1, 18, 18, 4>}, {pipeline_mode = #tpu.pipeline_mode<synchronous>, transform_indices = @transform_1, window_bounds = array<i64: 3, 3, 4, 8>}, {transform_indices = @transform_2, window_bounds = array<i64: 1, 8, 16, 8>}, {transform_indices = @transform_3, window_bounds = array<i64: 1, 1, 2, 8>}]} {
    %c8_i32 = arith.constant 8 : i32
    %0 = arith.muli %arg1, %c8_i32 : i32
    %c0 = arith.constant 0 : index
    %1 = arith.index_cast %0 : i32 to index
    %c0_0 = arith.constant 0 : index
    %c0_1 = arith.constant 0 : index
    %2 = vector.load %arg2[%c0, %1, %c0_0, %c0_1] : memref<1x18x18x4xbf16, #tpu.memory_space<vmem>>, vector<1x10x16x4xbf16>
    %3 = vector.extract_strided_slice %2 {offsets = [0, 0, 0, 0], sizes = [1, 8, 16, 4], strides = [1, 1, 1, 1]} : vector<1x10x16x4xbf16> to vector<1x8x16x4xbf16>
    %4 = vector.shape_cast %3 : vector<1x8x16x4xbf16> to vector<128x4xbf16>
    %c0_2 = arith.constant 0 : index
    %c0_3 = arith.constant 0 : index
    %c0_4 = arith.constant 0 : index
    %c0_5 = arith.constant 0 : index
    %5 = vector.load %arg3[%c0_2, %c0_3, %c0_4, %c0_5] : memref<3x3x4x8xbf16, #tpu.memory_space<vmem>>, vector<1x1x4x8xbf16>
    %6 = vector.shape_cast %5 : vector<1x1x4x8xbf16> to vector<4x8xbf16>
    %cst = arith.constant dense<0.000000e+00> : vector<128x8xf32>
    %7 = tpu.matmul %4, %6, %cst {dimension_numbers = #tpu.dot_dimension_numbers<[1], [0], [0], [1], [0, 0, 1, 1], [], []>} : vector<128x4xbf16>, vector<4x8xbf16>, vector<128x8xf32> -> vector<128x8xf32>
    %c0_6 = arith.constant 0 : index
    %c0_7 = arith.constant 0 : index
    %8 = vector.load %arg6[%c0_6, %c0_7] : memref<128x8xf32, #tpu.memory_space<vmem>>, vector<128x8xf32>
    tpu.vector_store %arg6[%c0_6, %c0_7], %7 {strides = array<i32>} : memref<128x8xf32, #tpu.memory_space<vmem>>, vector<128x8xf32>,
    %9 = vector.extract_strided_slice %2 {offsets = [0, 1, 0, 0], sizes = [1, 8, 16, 4], strides = [1, 1, 1, 1]} : vector<1x10x16x4xbf16> to vector<1x8x16x4xbf16>
    %10 = vector.shape_cast %9 : vector<1x8x16x4xbf16> to vector<128x4xbf16>
    %c1 = arith.constant 1 : index
    %c0_8 = arith.constant 0 : index
    %c0_9 = arith.constant 0 : index
    %c0_10 = arith.constant 0 : index
    %11 = vector.load %arg3[%c1, %c0_8, %c0_9, %c0_10] : memref<3x3x4x8xbf16, #tpu.memory_space<vmem>>, vector<1x1x4x8xbf16>
    %12 = vector.shape_cast %11 : vector<1x1x4x8xbf16> to vector<4x8xbf16>
    %cst_11 = arith.constant dense<0.000000e+00> : vector<128x8xf32>
    %13 = tpu.matmul %10, %12, %cst_11 {dimension_numbers = #tpu.dot_dimension_numbers<[1], [0], [0], [1], [0, 0, 1, 1], [], []>} : vector<128x4xbf16>, vector<4x8xbf16>, vector<128x8xf32> -> vector<128x8xf32>
    %c0_12 = arith.constant 0 : index
    %c0_13 = arith.constant 0 : index
    %14 = vector.load %arg6[%c0_12, %c0_13] : memref<128x8xf32, #tpu.memory_space<vmem>>, vector<128x8xf32>
    %15 = arith.addf %14, %13 : vector<128x8xf32>
    %c0_14 = arith.constant 0 : index
    %c0_15 = arith.constant 0 : index
    %16 = vector.load %arg6[%c0_14, %c0_15] : memref<128x8xf32, #tpu.memory_space<vmem>>, vector<128x8xf32>
    tpu.vector_store %arg6[%c0_14, %c0_15], %15 {strides = array<i32>} : memref<128x8xf32, #tpu.memory_space<vmem>>, vector<128x8xf32>,
    %17 = vector.extract_strided_slice %2 {offsets = [0, 2, 0, 0], sizes = [1, 8, 16, 4], strides = [1, 1, 1, 1]} : vector<1x10x16x4xbf16> to vector<1x8x16x4xbf16>
    %18 = vector.shape_cast %17 : vector<1x8x16x4xbf16> to vector<128x4xbf16>
    %c2 = arith.constant 2 : index
    %c0_16 = arith.constant 0 : index
    %c0_17 = arith.constant 0 : index
    %c0_18 = arith.constant 0 : index
    %19 = vector.load %arg3[%c2, %c0_16, %c0_17, %c0_18] : memref<3x3x4x8xbf16, #tpu.memory_space<vmem>>, vector<1x1x4x8xbf16>
    %20 = vector.shape_cast %19 : vector<1x1x4x8xbf16> to vector<4x8xbf16>
    %cst_19 = arith.constant dense<0.000000e+00> : vector<128x8xf32>
    %21 = tpu.matmul %18, %20, %cst_19 {dimension_numbers = #tpu.dot_dimension_numbers<[1], [0], [0], [1], [0, 0, 1, 1], [], []>} : vector<128x4xbf16>, vector<4x8xbf16>, vector<128x8xf32> -> vector<128x8xf32>
    %c0_20 = arith.constant 0 : index
    %c0_21 = arith.constant 0 : index
    %22 = vector.load %arg6[%c0_20, %c0_21] : memref<128x8xf32, #tpu.memory_space<vmem>>, vector<128x8xf32>
    %23 = arith.addf %22, %21 : vector<128x8xf32>
    %c0_22 = arith.constant 0 : index
    %c0_23 = arith.constant 0 : index
    %24 = vector.load %arg6[%c0_22, %c0_23] : memref<128x8xf32, #tpu.memory_space<vmem>>, vector<128x8xf32>
    tpu.vector_store %arg6[%c0_22, %c0_23], %23 {strides = array<i32>} : memref<128x8xf32, #tpu.memory_space<vmem>>, vector<128x8xf32>,
    %c0_24 = arith.constant 0 : index
    %25 = arith.index_cast %0 : i32 to index
    %c1_25 = arith.constant 1 : index
    %c0_26 = arith.constant 0 : index
    %26 = vector.load %arg2[%c0_24, %25, %c1_25, %c0_26] : memref<1x18x18x4xbf16, #tpu.memory_space<vmem>>, vector<1x10x16x4xbf16>
    %27 = vector.extract_strided_slice %26 {offsets = [0, 0, 0, 0], sizes = [1, 8, 16, 4], strides = [1, 1, 1, 1]} : vector<1x10x16x4xbf16> to vector<1x8x16x4xbf16>
    %28 = vector.shape_cast %27 : vector<1x8x16x4xbf16> to vector<128x4xbf16>
    %c0_27 = arith.constant 0 : index
    %c1_28 = arith.constant 1 : index
    %c0_29 = arith.constant 0 : index
    %c0_30 = arith.constant 0 : index
    %29 = vector.load %arg3[%c0_27, %c1_28, %c0_29, %c0_30] : memref<3x3x4x8xbf16, #tpu.memory_space<vmem>>, vector<1x1x4x8xbf16>
    %30 = vector.shape_cast %29 : vector<1x1x4x8xbf16> to vector<4x8xbf16>
    %cst_31 = arith.constant dense<0.000000e+00> : vector<128x8xf32>
    %31 = tpu.matmul %28, %30, %cst_31 {dimension_numbers = #tpu.dot_dimension_numbers<[1], [0], [0], [1], [0, 0, 1, 1], [], []>} : vector<128x4xbf16>, vector<4x8xbf16>, vector<128x8xf32> -> vector<128x8xf32>
    %c0_32 = arith.constant 0 : index
    %c0_33 = arith.constant 0 : index
    %32 = vector.load %arg6[%c0_32, %c0_33] : memref<128x8xf32, #tpu.memory_space<vmem>>, vector<128x8xf32>
    %33 = arith.addf %32, %31 : vector<128x8xf32>
    %c0_34 = arith.constant 0 : index
    %c0_35 = arith.constant 0 : index
    %34 = vector.load %arg6[%c0_34, %c0_35] : memref<128x8xf32, #tpu.memory_space<vmem>>, vector<128x8xf32>
    tpu.vector_store %arg6[%c0_34, %c0_35], %33 {strides = array<i32>} : memref<128x8xf32, #tpu.memory_space<vmem>>, vector<128x8xf32>,
    %35 = vector.extract_strided_slice %26 {offsets = [0, 1, 0, 0], sizes = [1, 8, 16, 4], strides = [1, 1, 1, 1]} : vector<1x10x16x4xbf16> to vector<1x8x16x4xbf16>
    %36 = vector.shape_cast %35 : vector<1x8x16x4xbf16> to vector<128x4xbf16>
    %c1_36 = arith.constant 1 : index
    %c1_37 = arith.constant 1 : index
    %c0_38 = arith.constant 0 : index
    %c0_39 = arith.constant 0 : index
    %37 = vector.load %arg3[%c1_36, %c1_37, %c0_38, %c0_39] : memref<3x3x4x8xbf16, #tpu.memory_space<vmem>>, vector<1x1x4x8xbf16>
    %38 = vector.shape_cast %37 : vector<1x1x4x8xbf16> to vector<4x8xbf16>
    %cst_40 = arith.constant dense<0.000000e+00> : vector<128x8xf32>
    %39 = tpu.matmul %36, %38, %cst_40 {dimension_numbers = #tpu.dot_dimension_numbers<[1], [0], [0], [1], [0, 0, 1, 1], [], []>} : vector<128x4xbf16>, vector<4x8xbf16>, vector<128x8xf32> -> vector<128x8xf32>
    %c0_41 = arith.constant 0 : index
    %c0_42 = arith.constant 0 : index
    %40 = vector.load %arg6[%c0_41, %c0_42] : memref<128x8xf32, #tpu.memory_space<vmem>>, vector<128x8xf32>
    %41 = arith.addf %40, %39 : vector<128x8xf32>
    %c0_43 = arith.constant 0 : index
    %c0_44 = arith.constant 0 : index
    %42 = vector.load %arg6[%c0_43, %c0_44] : memref<128x8xf32, #tpu.memory_space<vmem>>, vector<128x8xf32>
    tpu.vector_store %arg6[%c0_43, %c0_44], %41 {strides = array<i32>} : memref<128x8xf32, #tpu.memory_space<vmem>>, vector<128x8xf32>,
    %43 = vector.extract_strided_slice %26 {offsets = [0, 2, 0, 0], sizes = [1, 8, 16, 4], strides = [1, 1, 1, 1]} : vector<1x10x16x4xbf16> to vector<1x8x16x4xbf16>
    %44 = vector.shape_cast %43 : vector<1x8x16x4xbf16> to vector<128x4xbf16>
    %c2_45 = arith.constant 2 : index
    %c1_46 = arith.constant 1 : index
    %c0_47 = arith.constant 0 : index
    %c0_48 = arith.constant 0 : index
    %45 = vector.load %arg3[%c2_45, %c1_46, %c0_47, %c0_48] : memref<3x3x4x8xbf16, #tpu.memory_space<vmem>>, vector<1x1x4x8xbf16>
    %46 = vector.shape_cast %45 : vector<1x1x4x8xbf16> to vector<4x8xbf16>
    %cst_49 = arith.constant dense<0.000000e+00> : vector<128x8xf32>
    %47 = tpu.matmul %44, %46, %cst_49 {dimension_numbers = #tpu.dot_dimension_numbers<[1], [0], [0], [1], [0, 0, 1, 1], [], []>} : vector<128x4xbf16>, vector<4x8xbf16>, vector<128x8xf32> -> vector<128x8xf32>
    %c0_50 = arith.constant 0 : index
    %c0_51 = arith.constant 0 : index
    %48 = vector.load %arg6[%c0_50, %c0_51] : memref<128x8xf32, #tpu.memory_space<vmem>>, vector<128x8xf32>
    %49 = arith.addf %48, %47 : vector<128x8xf32>
    %c0_52 = arith.constant 0 : index
    %c0_53 = arith.constant 0 : index
    %50 = vector.load %arg6[%c0_52, %c0_53] : memref<128x8xf32, #tpu.memory_space<vmem>>, vector<128x8xf32>
    tpu.vector_store %arg6[%c0_52, %c0_53], %49 {strides = array<i32>} : memref<128x8xf32, #tpu.memory_space<vmem>>, vector<128x8xf32>,
    %c0_54 = arith.constant 0 : index
    %51 = arith.index_cast %0 : i32 to index
    %c2_55 = arith.constant 2 : index
    %c0_56 = arith.constant 0 : index
    %52 = vector.load %arg2[%c0_54, %51, %c2_55, %c0_56] : memref<1x18x18x4xbf16, #tpu.memory_space<vmem>>, vector<1x10x16x4xbf16>
    %53 = vector.extract_strided_slice %52 {offsets = [0, 0, 0, 0], sizes = [1, 8, 16, 4], strides = [1, 1, 1, 1]} : vector<1x10x16x4xbf16> to vector<1x8x16x4xbf16>
    %54 = vector.shape_cast %53 : vector<1x8x16x4xbf16> to vector<128x4xbf16>
    %c0_57 = arith.constant 0 : index
    %c2_58 = arith.constant 2 : index
    %c0_59 = arith.constant 0 : index
    %c0_60 = arith.constant 0 : index
    %55 = vector.load %arg3[%c0_57, %c2_58, %c0_59, %c0_60] : memref<3x3x4x8xbf16, #tpu.memory_space<vmem>>, vector<1x1x4x8xbf16>
    %56 = vector.shape_cast %55 : vector<1x1x4x8xbf16> to vector<4x8xbf16>
    %cst_61 = arith.constant dense<0.000000e+00> : vector<128x8xf32>
    %57 = tpu.matmul %54, %56, %cst_61 {dimension_numbers = #tpu.dot_dimension_numbers<[1], [0], [0], [1], [0, 0, 1, 1], [], []>} : vector<128x4xbf16>, vector<4x8xbf16>, vector<128x8xf32> -> vector<128x8xf32>
    %c0_62 = arith.constant 0 : index
    %c0_63 = arith.constant 0 : index
    %58 = vector.load %arg6[%c0_62, %c0_63] : memref<128x8xf32, #tpu.memory_space<vmem>>, vector<128x8xf32>
    %59 = arith.addf %58, %57 : vector<128x8xf32>
    %c0_64 = arith.constant 0 : index
    %c0_65 = arith.constant 0 : index
    %60 = vector.load %arg6[%c0_64, %c0_65] : memref<128x8xf32, #tpu.memory_space<vmem>>, vector<128x8xf32>
    tpu.vector_store %arg6[%c0_64, %c0_65], %59 {strides = array<i32>} : memref<128x8xf32, #tpu.memory_space<vmem>>, vector<128x8xf32>,
    %61 = vector.extract_strided_slice %52 {offsets = [0, 1, 0, 0], sizes = [1, 8, 16, 4], strides = [1, 1, 1, 1]} : vector<1x10x16x4xbf16> to vector<1x8x16x4xbf16>
    %62 = vector.shape_cast %61 : vector<1x8x16x4xbf16> to vector<128x4xbf16>
    %c1_66 = arith.constant 1 : index
    %c2_67 = arith.constant 2 : index
    %c0_68 = arith.constant 0 : index
    %c0_69 = arith.constant 0 : index
    %63 = vector.load %arg3[%c1_66, %c2_67, %c0_68, %c0_69] : memref<3x3x4x8xbf16, #tpu.memory_space<vmem>>, vector<1x1x4x8xbf16>
    %64 = vector.shape_cast %63 : vector<1x1x4x8xbf16> to vector<4x8xbf16>
    %cst_70 = arith.constant dense<0.000000e+00> : vector<128x8xf32>
    %65 = tpu.matmul %62, %64, %cst_70 {dimension_numbers = #tpu.dot_dimension_numbers<[1], [0], [0], [1], [0, 0, 1, 1], [], []>} : vector<128x4xbf16>, vector<4x8xbf16>, vector<128x8xf32> -> vector<128x8xf32>
    %c0_71 = arith.constant 0 : index
    %c0_72 = arith.constant 0 : index
    %66 = vector.load %arg6[%c0_71, %c0_72] : memref<128x8xf32, #tpu.memory_space<vmem>>, vector<128x8xf32>
    %67 = arith.addf %66, %65 : vector<128x8xf32>
    %c0_73 = arith.constant 0 : index
    %c0_74 = arith.constant 0 : index
    %68 = vector.load %arg6[%c0_73, %c0_74] : memref<128x8xf32, #tpu.memory_space<vmem>>, vector<128x8xf32>
    tpu.vector_store %arg6[%c0_73, %c0_74], %67 {strides = array<i32>} : memref<128x8xf32, #tpu.memory_space<vmem>>, vector<128x8xf32>,
    %69 = vector.extract_strided_slice %52 {offsets = [0, 2, 0, 0], sizes = [1, 8, 16, 4], strides = [1, 1, 1, 1]} : vector<1x10x16x4xbf16> to vector<1x8x16x4xbf16>
    %70 = vector.shape_cast %69 : vector<1x8x16x4xbf16> to vector<128x4xbf16>
    %c2_75 = arith.constant 2 : index
    %c2_76 = arith.constant 2 : index
    %c0_77 = arith.constant 0 : index
    %c0_78 = arith.constant 0 : index
    %71 = vector.load %arg3[%c2_75, %c2_76, %c0_77, %c0_78] : memref<3x3x4x8xbf16, #tpu.memory_space<vmem>>, vector<1x1x4x8xbf16>
    %72 = vector.shape_cast %71 : vector<1x1x4x8xbf16> to vector<4x8xbf16>
    %cst_79 = arith.constant dense<0.000000e+00> : vector<128x8xf32>
    %73 = tpu.matmul %70, %72, %cst_79 {dimension_numbers = #tpu.dot_dimension_numbers<[1], [0], [0], [1], [0, 0, 1, 1], [], []>} : vector<128x4xbf16>, vector<4x8xbf16>, vector<128x8xf32> -> vector<128x8xf32>
    %c0_80 = arith.constant 0 : index
    %c0_81 = arith.constant 0 : index
    %74 = vector.load %arg6[%c0_80, %c0_81] : memref<128x8xf32, #tpu.memory_space<vmem>>, vector<128x8xf32>
    %75 = arith.addf %74, %73 : vector<128x8xf32>
    %c0_82 = arith.constant 0 : index
    %c0_83 = arith.constant 0 : index
    %76 = vector.load %arg6[%c0_82, %c0_83] : memref<128x8xf32, #tpu.memory_space<vmem>>, vector<128x8xf32>
    tpu.vector_store %arg6[%c0_82, %c0_83], %75 {strides = array<i32>} : memref<128x8xf32, #tpu.memory_space<vmem>>, vector<128x8xf32>,
    %c0_84 = arith.constant 0 : index
    %c0_85 = arith.constant 0 : index
    %77 = vector.load %arg6[%c0_84, %c0_85] : memref<128x8xf32, #tpu.memory_space<vmem>>, vector<128x8xf32>
    %78 = vector.shape_cast %77 : vector<128x8xf32> to vector<1x8x16x8xf32>
    %79 = arith.truncf %78 : vector<1x8x16x8xf32> to vector<1x8x16x8xbf16>
    %c0_86 = arith.constant 0 : index
    %c0_87 = arith.constant 0 : index
    %c0_88 = arith.constant 0 : index
    %c0_89 = arith.constant 0 : index
    %80 = vector.load %arg4[%c0_86, %c0_87, %c0_88, %c0_89] : memref<1x8x16x8xbf16, #tpu.memory_space<vmem>>, vector<1x8x16x8xbf16>
    tpu.vector_store %arg4[%c0_86, %c0_87, %c0_88, %c0_89], %79 {strides = array<i32>} : memref<1x8x16x8xbf16, #tpu.memory_space<vmem>>, vector<1x8x16x8xbf16>,
    %cst_90 = arith.constant dense<0.000000e+00> : vector<8xf32>
    %81 = vector.multi_reduction <add>, %77, %cst_90 [0] : vector<128x8xf32> to vector<8xf32>
    %82 = vector.shape_cast %81 : vector<8xf32> to vector<1x8xf32>
    %83 = arith.mulf %77, %77 : vector<128x8xf32>
    %cst_91 = arith.constant dense<0.000000e+00> : vector<8xf32>
    %84 = vector.multi_reduction <add>, %83, %cst_91 [0] : vector<128x8xf32> to vector<8xf32>
    %85 = vector.shape_cast %84 : vector<8xf32> to vector<1x8xf32>
    %86 = tpu.concatenate %82, %85 in 0 : vector<1x8xf32>, vector<1x8xf32> -> vector<2x8xf32>
    %87 = vector.shape_cast %86 : vector<2x8xf32> to vector<1x1x2x8xf32>
    %c0_92 = arith.constant 0 : index
    %c0_93 = arith.constant 0 : index
    %c0_94 = arith.constant 0 : index
    %c0_95 = arith.constant 0 : index
    %88 = vector.load %arg5[%c0_92, %c0_93, %c0_94, %c0_95] : memref<1x1x2x8xf32, #tpu.memory_space<vmem>>, vector<1x1x2x8xf32>
    tpu.vector_store %arg5[%c0_92, %c0_93, %c0_94, %c0_95], %87 {strides = array<i32>} : memref<1x1x2x8xf32, #tpu.memory_space<vmem>>, vector<1x1x2x8xf32>,
    return
  }
  func.func @transform_0(%arg0: i32, %arg1: i32) -> (i32, i32, i32, i32) {
    %c0_i32 = arith.constant 0 : i32
    %c0_i32_0 = arith.constant 0 : i32
    %c0_i32_1 = arith.constant 0 : i32
    %c0_i32_2 = arith.constant 0 : i32
    return %arg0, %c0_i32, %c0_i32_0, %c0_i32_1 : i32, i32, i32, i32
  }
  func.func @transform_1(%arg0: i32, %arg1: i32) -> (i32, i32, i32, i32) {
    %c0_i32 = arith.constant 0 : i32
    %c0_i32_0 = arith.constant 0 : i32
    %c0_i32_1 = arith.constant 0 : i32
    %c0_i32_2 = arith.constant 0 : i32
    %c0_i32_3 = arith.constant 0 : i32
    return %c0_i32, %c0_i32_0, %c0_i32_1, %c0_i32_2 : i32, i32, i32, i32
  }
  func.func @transform_2(%arg0: i32, %arg1: i32) -> (i32, i32, i32, i32) {
    %c0_i32 = arith.constant 0 : i32
    %c0_i32_0 = arith.constant 0 : i32
    %c0_i32_1 = arith.constant 0 : i32
    return %arg0, %arg1, %c0_i32, %c0_i32_0 : i32, i32, i32, i32
  }
  func.func @transform_3(%arg0: i32, %arg1: i32) -> (i32, i32, i32, i32) {
    %c0_i32 = arith.constant 0 : i32
    %c0_i32_0 = arith.constant 0 : i32
    %c0_i32_1 = arith.constant 0 : i32
    return %arg0, %arg1, %c0_i32, %c0_i32_0 : i32, i32, i32, i32
  }
}

module attributes {stable_mosaic.version = 11 : i64} {
  func.func @_bn_relu_kernel(%arg0: i32, %arg1: memref<128x8xbf16, #tpu.memory_space<vmem>>, %arg2: memref<1x8xf32, #tpu.memory_space<vmem>>, %arg3: memref<1x8xf32, #tpu.memory_space<vmem>>, %arg4: memref<128x8xf32, #tpu.memory_space<vmem>>) attributes {dimension_semantics = [#tpu.dimension_semantics<parallel>], iteration_bounds = array<i64: 4>, scalar_prefetch = 0 : i64, scratch_operands = 0 : i64, tpu.core_type = #tpu.core_type<tc>, window_params = [{transform_indices = @transform_0, window_bounds = array<i64: 128, 8>}, {pipeline_mode = #tpu.pipeline_mode<synchronous>, transform_indices = @transform_1, window_bounds = array<i64: 1, 8>}, {pipeline_mode = #tpu.pipeline_mode<synchronous>, transform_indices = @transform_2, window_bounds = array<i64: 1, 8>}, {transform_indices = @transform_3, window_bounds = array<i64: 128, 8>}]} {
    %c0 = arith.constant 0 : index
    %c0_0 = arith.constant 0 : index
    %0 = vector.load %arg1[%c0, %c0_0] : memref<128x8xbf16, #tpu.memory_space<vmem>>, vector<128x8xbf16>
    %1 = arith.extf %0 : vector<128x8xbf16> to vector<128x8xf32>
    %c0_1 = arith.constant 0 : index
    %c0_2 = arith.constant 0 : index
    %2 = vector.load %arg2[%c0_1, %c0_2] : memref<1x8xf32, #tpu.memory_space<vmem>>, vector<1x8xf32>
    %3 = vector.broadcast %2 : vector<1x8xf32> to vector<128x8xf32>
    %4 = arith.mulf %1, %3 : vector<128x8xf32>
    %c0_3 = arith.constant 0 : index
    %c0_4 = arith.constant 0 : index
    %5 = vector.load %arg3[%c0_3, %c0_4] : memref<1x8xf32, #tpu.memory_space<vmem>>, vector<1x8xf32>
    %6 = vector.broadcast %5 : vector<1x8xf32> to vector<128x8xf32>
    %7 = arith.addf %4, %6 : vector<128x8xf32>
    %cst = arith.constant 0.000000e+00 : f32
    %8 = vector.broadcast %cst : f32 to vector<128x8xf32>
    %9 = arith.maximumf %7, %8 : vector<128x8xf32>
    %c0_5 = arith.constant 0 : index
    %c0_6 = arith.constant 0 : index
    %10 = vector.load %arg4[%c0_5, %c0_6] : memref<128x8xf32, #tpu.memory_space<vmem>>, vector<128x8xf32>
    tpu.vector_store %arg4[%c0_5, %c0_6], %9 {strides = array<i32>} : memref<128x8xf32, #tpu.memory_space<vmem>>, vector<128x8xf32>,
    return
  }
  func.func @transform_0(%arg0: i32) -> (i32, i32) {
    %c0_i32 = arith.constant 0 : i32
    %c0_i32_0 = arith.constant 0 : i32
    return %arg0, %c0_i32 : i32, i32
  }
  func.func @transform_1(%arg0: i32) -> (i32, i32) {
    %c0_i32 = arith.constant 0 : i32
    %c0_i32_0 = arith.constant 0 : i32
    %c0_i32_1 = arith.constant 0 : i32
    return %c0_i32, %c0_i32_0 : i32, i32
  }
  func.func @transform_2(%arg0: i32) -> (i32, i32) {
    %c0_i32 = arith.constant 0 : i32
    %c0_i32_0 = arith.constant 0 : i32
    %c0_i32_1 = arith.constant 0 : i32
    return %c0_i32, %c0_i32_0 : i32, i32
  }
  func.func @transform_3(%arg0: i32) -> (i32, i32) {
    %c0_i32 = arith.constant 0 : i32
    %c0_i32_0 = arith.constant 0 : i32
    return %arg0, %c0_i32 : i32, i32
  }
}

</mosaic_0001>

<bundles_post_ra>
// kernel: conv_bn_relu.3
= control target key start
LH: loop header
LB: loop body
LE: loop exit
PB: predicated region body
PF: predicated region fallthrough
CT: control target
= control target key end

     0   :  { %s429_s12 = smov 0   ;;  %s536_s0 = inlined_call_operand.vmem [shape: bf16[512,8], index: 0, kind: input, shape index: {}]   ;;  %s537_s1 = inlined_call_operand.vmem [shape: f32[1,8], index: 1, kind: input, shape index: {}]   ;;  %s538_s2 = inlined_call_operand.vmem [shape: f32[1,8], index: 2, kind: input, shape index: {}]   ;;  %s539_s3 = inlined_call_operand.vmem [shape: f32[512,8], index: 3, kind: output, shape index: {}]  }
   0x1 LB: > { %s341_s13 = sadd.s32 4294967295, %s407_s12   ;;  %p345_p0 = scmp.ge.s32.totalorder %s407_s12, 1  ;;  %s407_s12 = sphi %s429_s12, %s13_s12  }
   0x2   : > { %p138_p1 = scmp.lt.s32.totalorder %s407_s12, 5 }
   0x4   : > { %p139_p2 = pnand %p345_p0, %p138_p1 }
   0x5   : > { %s346_s14 = sshll.u32 (!%p139_p2), %s341_s13, 4  ;;  %v448_v0 = vld [vmem:[%s537_s1] ss:$0 sm:$0xff] (!%p139_p2)  ;;  %vm268_vm0 = vcmask (!%p139_p2), 64512  }
   0x6   : > { %142 = sbr.rel (%p139_p2) target bundleno = 37 (0x25), region = 32  ;;  %p163_p3 = scmp.lt.s32.totalorder (!%p139_p2), %s346_s14, 63  ;;  %v457_v9 = vld [vmem:[%s538_s2] ss:$0 sm:$0xff] (!%p139_p2) }
   0xd   : > { %s541_s14 = smov (!%p163_p3, %s346_s14), 63 }
   0xe   : > { %s347_s15 = sshll.u32 %s541_s14, 2  ;;  %s349_s23 = sshll.u32 %s541_s14, 3 }
   0xf   : > { %s443_s18 = scalar_lea.vmem %s536_s0, %s347_s15  ;;  %s475_s26 = scalar_lea.vmem %s539_s3, %s349_s23 }
  0x10   : > { %v355_v1 = vld [vmem:[%s443_s18] sm:$0xff]   ;;  %v386_v2 = vld [vmem:[%s443_s18 + $0x8] sm:$0xff]   ;;  %v387_v3 = vld [vmem:[%s443_s18 + $0x10] sm:$0xff]  }
  0x11   : > { %v356_v4 = vunpack.c.l.bf16 %v355_v1  ;;  %v357_v5 = vunpack.c.h.bf16 %v355_v1  ;;  %v360_v6 = vunpack.c.l.bf16 %v386_v2  ;;  %v361_v7 = vunpack.c.h.bf16 %v386_v2  ;;  %v388_v8 = vld [vmem:[%s443_s18 + $0x18] sm:$0xff]   ;;  %v389_v30 = vld [vmem:[%s443_s18 + $0x20] sm:$0xff]   ;;  %v390_v31 = vld [vmem:[%s443_s18 + $0x28] sm:$0xff]  }
  0x12   : > { %v364_v10 = vunpack.c.l.bf16 %v387_v3  ;;  %v365_v11 = vunpack.c.h.bf16 %v387_v3  ;;  %v368_v12 = vunpack.c.l.bf16 %v388_v8  ;;  %v369_v13 = vunpack.c.h.bf16 %v388_v8  ;;  %v391_v36 = vld [vmem:[%s443_s18 + $0x30] sm:$0xff]   ;;  %v392_v37 = vld [vmem:[%s443_s18 + $0x38] sm:$0xff]  }
  0x13   : > { %v213_v14 = vmul.f32 %v356_v4, %v448_v0  ;;  %v214_v15 = vmul.f32 %v357_v5, %v448_v0  ;;  %v215_v16 = vmul.f32 %v360_v6, %v448_v0  ;;  %v216_v17 = vmul.f32 %v361_v7, %v448_v0 }
  0x14   : > { %v217_v18 = vmul.f32 %v364_v10, %v448_v0  ;;  %v218_v19 = vmul.f32 %v365_v11, %v448_v0  ;;  %v219_v20 = vmul.f32 %v368_v12, %v448_v0  ;;  %v220_v21 = vmul.f32 %v369_v13, %v448_v0 }
  0x15   : > { %v236_v22 = vadd.f32 %v457_v9, %v213_v14  ;;  %v237_v23 = vadd.f32 %v457_v9, %v214_v15  ;;  %v238_v24 = vadd.f32 %v457_v9, %v215_v16  ;;  %v239_v25 = vadd.f32 %v457_v9, %v216_v17 }
  0x16   : > { %v240_v26 = vadd.f32 %v457_v9, %v217_v18  ;;  %v241_v27 = vadd.f32 %v457_v9, %v218_v19  ;;  %v242_v28 = vadd.f32 %v457_v9, %v219_v20  ;;  %v243_v29 = vadd.f32 %v457_v9, %v220_v21 }
  0x17   : > { %v252_v32 = vmax.f32 %v236_v22, 0.0  ;;  %v253_v33 = vmax.f32 %v237_v23, 0.0  ;;  %v254_v34 = vmax.f32 %v238_v24, 0.0  ;;  %v255_v35 = vmax.f32 %v239_v25, 0.0 }
  0x18   : > { %v256_v38 = vmax.f32 %v240_v26, 0.0  ;;  %v257_v39 = vmax.f32 %v241_v27, 0.0  ;;  %v258_v40 = vmax.f32 %v242_v28, 0.0  ;;  %v259_v41 = vmax.f32 %v243_v29, 0.0 }
  0x19   : > { %269 = vst.msk [vmem:[%s475_s26] sm:$0xff] %vm268_vm0, %v252_v32  ;;  %270 = vst.msk [vmem:[%s475_s26 + $0x8] sm:$0xff] %vm268_vm0, %v253_v33  ;;  %v372_v42 = vunpack.c.l.bf16 %v389_v30  ;;  %v373_v43 = vunpack.c.h.bf16 %v389_v30  ;;  %v376_v44 = vunpack.c.l.bf16 %v390_v31  ;;  %v377_v45 = vunpack.c.h.bf16 %v390_v31 }
  0x1a   : > { %271 = vst.msk [vmem:[%s475_s26 + $0x10] sm:$0xff] %vm268_vm0, %v254_v34  ;;  %272 = vst.msk [vmem:[%s475_s26 + $0x18] sm:$0xff] %vm268_vm0, %v255_v35  ;;  %v380_v46 = vunpack.c.l.bf16 %v391_v36  ;;  %v381_v47 = vunpack.c.h.bf16 %v391_v36  ;;  %v384_v48 = vunpack.c.l.bf16 %v392_v37  ;;  %v385_v49 = vunpack.c.h.bf16 %v392_v37 }
  0x1b   : > { %273 = vst.msk [vmem:[%s475_s26 + $0x20] sm:$0xff] %vm268_vm0, %v256_v38  ;;  %274 = vst.msk [vmem:[%s475_s26 + $0x28] sm:$0xff] %vm268_vm0, %v257_v39  ;;  %v221_v50 = vmul.f32 %v372_v42, %v448_v0  ;;  %v222_v51 = vmul.f32 %v373_v43, %v448_v0  ;;  %v223_v52 = vmul.f32 %v376_v44, %v448_v0 }
  0x1c   : > { %275 = vst.msk [vmem:[%s475_s26 + $0x30] sm:$0xff] %vm268_vm0, %v258_v40  ;;  %276 = vst.msk [vmem:[%s475_s26 + $0x38] sm:$0xff] %vm268_vm0, %v259_v41  ;;  %v224_v53 = vmul.f32 %v377_v45, %v448_v0  ;;  %v225_v54 = vmul.f32 %v380_v46, %v448_v0  ;;  %v226_v55 = vmul.f32 %v381_v47, %v448_v0 }
  0x1d   : > { %v227_v56 = vmul.f32 %v384_v48, %v448_v0  ;;  %v228_v57 = vmul.f32 %v385_v49, %v448_v0  ;;  %v244_v58 = vadd.f32 %v457_v9, %v221_v50  ;;  %v245_v59 = vadd.f32 %v457_v9, %v222_v51 }
  0x1e   : > { %v246_v60 = vadd.f32 %v457_v9, %v223_v52  ;;  %v247_v61 = vadd.f32 %v457_v9, %v224_v53  ;;  %v248_v62 = vadd.f32 %v457_v9, %v225_v54  ;;  %v249_v63 = vadd.f32 %v457_v9, %v226_v55 }
  0x1f   : > { %v250_v0 = vadd.f32 %v457_v9, %v227_v56  ;;  %v251_v1 = vadd.f32 %v457_v9, %v228_v57  ;;  %v260_v2 = vmax.f32 %v244_v58, 0.0  ;;  %v261_v3 = vmax.f32 %v245_v59, 0.0 }
  0x20   : > { %v262_v4 = vmax.f32 %v246_v60, 0.0  ;;  %v263_v5 = vmax.f32 %v247_v61, 0.0  ;;  %v264_v6 = vmax.f32 %v248_v62, 0.0  ;;  %v265_v7 = vmax.f32 %v249_v63, 0.0 }
  0x21   : > { %v266_v8 = vmax.f32 %v250_v0, 0.0  ;;  %v267_v10 = vmax.f32 %v251_v1, 0.0  ;;  %277 = vst.msk [vmem:[%s475_s26 + $0x40] sm:$0xff] %vm268_vm0, %v260_v2  ;;  %278 = vst.msk [vmem:[%s475_s26 + $0x48] sm:$0xff] %vm268_vm0, %v261_v3 }
  0x22   : > { %279 = vst.msk [vmem:[%s475_s26 + $0x50] sm:$0xff] %vm268_vm0, %v262_v4  ;;  %280 = vst.msk [vmem:[%s475_s26 + $0x58] sm:$0xff] %vm268_vm0, %v263_v5 }
  0x23   : > { %281 = vst.msk [vmem:[%s475_s26 + $0x60] sm:$0xff] %vm268_vm0, %v264_v6  ;;  %282 = vst.msk [vmem:[%s475_s26 + $0x68] sm:$0xff] %vm268_vm0, %v265_v7 }
  0x24   : > { %283 = vst.msk [vmem:[%s475_s26 + $0x70] sm:$0xff] %vm268_vm0, %v266_v8  ;;  %284 = vst.msk [vmem:[%s475_s26 + $0x78] sm:$0xff] %vm268_vm0, %v267_v10 }
  0x25 PF: > { %s13_s12 = sadd.s32 1, %s407_s12  }
  0x26   : > { %p10_p4 = scmp.ge.s32.totalorder %s13_s12, 6  }
  0x28   :  { %12 = sbr.rel (!%p10_p4) target bundleno = 1 (0x1), region = 62 }

// kernel: conv_bn_relu.2
= control target key start
LH: loop header
LB: loop body
LE: loop exit
PB: predicated region body
PF: predicated region fallthrough
CT: control target
= control target key end

     0   :  { %s3034_s12 = smov 0   ;;  %s3036_s13 = smov 0   ;;  %s3714_s0 = inlined_call_operand.vmem [shape: bf16[2,18,18,4], index: 0, kind: input, shape index: {}]   ;;  %s3715_s1 = inlined_call_operand.vmem [shape: bf16[3,3,4,8], index: 1, kind: input, shape index: {}]   ;;  %s3716_s2 = inlined_call_operand.vmem [shape: bf16[2,16,16,8], index: 2, kind: output, shape index: {0}]   ;;  %s3717_s3 = inlined_call_operand.vmem [shape: f32[2,2,2,8], index: 3, kind: output, shape index: {1}]  }
   0x1   :  { %s3038_s14 = smov 0   ;;  %s3040_s15 = smov 0  }
   0x2   :  { %s3042_s16 = smov 0  }
   0x3 LB: > { %s23_s17 = sadd.s32 1, %s3004_s14  ;;  %s26_s18 = sadd.s32 1, %s3008_s15  ;;  %s3012_s16 = sphi %s3042_s16, %s14_s16   ;;  %s3008_s15 = sphi %s3040_s15, %s3726_s15   ;;  %s3004_s14 = sphi %s3038_s14, %s3725_s14   ;;  %s3000_s13 = sphi %s3036_s13, %s3724_s13   ;;  %s2996_s12 = sphi %s3034_s12, %s3723_s12  }
   0x4   : > { %p24_p0 = scmp.ge.s32.totalorder %s23_s17, 2  ;;  %p2502_p1 = scmp.ge.s32.totalorder %s3012_s16, 1 }
   0x5   : > { %p156_p2 = scmp.lt.s32.totalorder %s3012_s16, 5 }
   0x6   : > { %s3728_s17 = smov (%p24_p0, %s23_s17), 0  ;;  %s3730_s18 = smov (!%p24_p0, %s26_s18), %s3008_s15 }
   0x7   : > { %p157_p3 = pnand %p2502_p1, %p156_p2  ;;  %p28_p4 = scmp.ge.s32.totalorder %s3730_s18, 2 }
   0x8   : > { %v242_v0 = vld [vmem:[%s3715_s1] sm:$0x3] (!%p157_p3)  ;;  %vm308_vm0 = vcmask (!%p157_p3), 1041408   ;;  %p193_p5 = scmp.lt.s32.totalorder (!%p157_p3), %s3000_s13, 1  ;;  %v2529_v2 = vld [vmem:[%s3715_s1 + $0x6] sm:$0x3] (!%p157_p3) }
   0x9   : > { %s3732_s18 = smov (%p28_p4, %s3730_s18), 0  ;;  %160 = sbr.rel (%p157_p3) target bundleno = 421 (0x1a5), region = 28 }
   0xa   : > { %2914 = vmatprep.subr.msk.bf16.mxu1 (!%p157_p3), %vm308_vm0, %v242_v0  ;;  %v310_v1 = vsel (!%p157_p3), %vm308_vm0, %v242_v0, 0  ;;  %2913 = vmatprep.subr.msk.bf16.mxu0 (!%p157_p3), %vm308_vm0, %v242_v0  ;;  %v2539_v3 = vld [vmem:[%s3715_s1 + $0xc] sm:$0x3] (!%p157_p3)  ;;  %s2651_s25 = smul.u32 (!%p157_p3), 96, %s2996_s12  ;;  %vm283_vm1 = vcmask (!%p157_p3), 31744   ;;  %v437_v7 = vsel (!%p157_p3), %vm308_vm0, %v2529_v2, 0 }
   0xb   : > { %2912 = vmatpush3.bf16.msra.mxu1 (!%p157_p3), %v310_v1  ;;  %2750 = vmatpush3.bf16.msra.mxu0 (!%p157_p3), %v310_v1  ;;  %v2549_v5 = vld [vmem:[%s3715_s1 + $0x2] sm:$0x3] (!%p157_p3)  ;;  %v2566_v9 = vld [vmem:[%s3715_s1 + $0x8] sm:$0x3] (!%p157_p3)  ;;  %v595_v11 = vsel (!%p157_p3), %vm308_vm0, %v2539_v3, 0  ;;  %vm1579_vm5 = vcmask (!%p157_p3), 1042432  }
   0xc   : > { %2915 = vmatprep.subr.msk.bf16.mxu1 (!%p157_p3), %vm308_vm0, %v2529_v2  ;;  %2916 = vmatprep.subr.msk.bf16.mxu0 (!%p157_p3), %vm308_vm0, %v2539_v3  ;;  %v1018_v19 = vsel (!%p157_p3), %vm308_vm0, %v2549_v5, 0  ;;  %v1198_v21 = vsel (!%p157_p3), %vm308_vm0, %v2566_v9, 0  ;;  %v3138_v24 = vld [vmem:[%s3715_s1 + $0xe] sm:$0x3] (!%p157_p3)  ;;  %v3145_v31 = vld [vmem:[%s3715_s1 + $0x4] sm:$0x3] (!%p157_p3) }
   0xd   : > { %vm772_vm2 = vsmask.f32 (!%p157_p3), 3328  ;;  %vm773_vm3 = vsmask.f32 (!%p157_p3), 7440  ;;  %vm1580_vm6 = vcmask (!%p157_p3), 1046532   ;;  %vm409_vm8 = vcmask (!%p157_p3), 64512  }
   0xe   : > { %vm3180_vm4 = vmor (!%p157_p3), %vm772_vm2, %vm773_vm3  ;;  %s2504_s23 = sshll.u32 (!%p157_p3), %s2996_s12, 3  ;;  %vm2248_vm9 = vcmask (!%p157_p3), 60416   ;;  %p211_p7 = scmp.lt.s32.totalorder (!%p157_p3), %s2996_s12, 1  ;;  %vm2355_vm10 = vcmask (!%p157_p3), 1040384   ;;  %vm2357_vm11 = vcmask (!%p157_p3), 58368  }
   0xf   : > { %vm3316_vm7 = vmor (!%p157_p3), %vm1579_vm5, %vm1580_vm6  ;;  %p3571_p6 = scmp.lt.s32.totalorder (!%p157_p3), %s2504_s23, 15 }
  0x10   : > { %s3734_s13 = smov (!%p193_p5, %s3000_s13), 1  ;;  %s3738_s12 = smov (!%p211_p7, %s2996_s12), 1 }
  0x11   : > { %s2923_s26 = smul.u32 216, %s3734_s13  ;;  %s3736_s23 = smov (!%p3571_p6, %s2504_s23), 15 }
  0x12   : > { %s2508_s5 = sshll.u32 %s3734_s13, 1 }
  0x13   : > { %s197_s29 = scalar_lea.vmem %s3714_s0, %s2923_s26  ;;  %s2506_s26 = sshll.u32 %s3734_s13, 5 }
  0x14   : > { %s3087_s30 = scalar_lea.vmem %s197_s29, %s2651_s25  ;;  %s2505_s25 = sshll.u32 %s3736_s23, 1 }
  0x15   : > { %v3090_v4 = vld [vmem:[%s3087_s30 + $0x30] sm:$0xff]   ;;  %v3096_v6 = vld [vmem:[%s3087_s30 + $0x3c] sm:$0xff]   ;;  %v3111_v12 = vld [vmem:[%s3087_s30 + $0x48] sm:$0xff]   ;;  %s205_s27 = sadd.s32 %s2506_s26, %s2505_s25  ;;  %s214_s6 = sadd.s32 %s2508_s5, %s3738_s12 }
  0x16   : > { %2759 = vmatprep.mubr.msk.bf16.mxu1 %vm283_vm1, %v3090_v4  ;;  %v2966_v8 = vld [vmem:[%s3087_s30] sm:$0xff]   ;;  %v2967_v10 = vld [vmem:[%s3087_s30 + $0xc] sm:$0xff]   ;;  %v2970_v13 = vld [vmem:[%s3087_s30 + $0x18] sm:$0xff]   ;;  %s2507_s28 = sshll.u32 %s205_s27, 2  ;;  %s2509_s7 = sshll.u32 %s214_s6, 1 }
  0x17   : > { %2760 = vmatmul.mubr.msk.bf16.vlgmr.msra.gmra.mrb[0].mxu1 %vm283_vm1, %v3096_v6  ;;  %2751 = vmatprep.mubr.msk.bf16.mxu0 %vm283_vm1, %v2966_v8  ;;  %v3119_v14 = vld [vmem:[%s3087_s30 + $0x54] sm:$0xff]   ;;  %v2971_v15 = vld [vmem:[%s3087_s30 + $0x24] sm:$0xff]   ;;  %v742_v16 = vld [vmem:[%s3087_s30] sm:$0xf]  ;;  %s3602_s4 = scalar_lea.vmem %s3716_s2, %s2507_s28  ;;  %s216_s10 = scalar_lea.vmem %s3717_s3, %s2509_s7 }
  0x18   : > { %2768 = vmatpush3.bf16.msra.mxu1 %v437_v7  ;;  %2752 = vmatmul.mubr.msk.bf16.vlgmr.msra.gmra.mrb[0].mxu0 %vm283_vm1, %v2967_v10  ;;  %v743_v17 = vld [vmem:[%s3087_s30 + $0x4] sm:$0xf]  ;;  %v745_v18 = vld [vmem:[%s3087_s30 + $0xc] sm:$0xf]  ;;  %v746_v20 = vld [vmem:[%s3087_s30 + $0x10] sm:$0xf] }
  0x19   : > { %2917 = vmatprep.subr.msk.bf16.mxu1 %vm308_vm0, %v2549_v5  ;;  %2763 = vmatprep.mubr.msk.bf16.mxu1 %vm283_vm1, %v3111_v12  ;;  %v776_v22 = vshrl.u32 %v742_v16, 16  ;;  %v779_v23 = vshll.u32 %v742_v16, 16  ;;  %v785_v25 = vshll.u32 %v743_v17, 16  ;;  %v789_v26 = vshrl.u32 %v743_v17, 16  ;;  %v748_v32 = vld [vmem:[%s3087_s30 + $0x18] sm:$0xf] }
  0x1a   : > { %2786 = vmatpush3.bf16.msra.mxu0 %v595_v11  ;;  %2755 = vmatprep.mubr.msk.bf16.mxu0 %vm283_vm1, %v2970_v13  ;;  %v800_v27 = vshrl.u32 %v745_v18, 16  ;;  %v803_v28 = vshll.u32 %v745_v18, 16  ;;  %v809_v29 = vshll.u32 %v746_v20, 16  ;;  %v813_v30 = vshrl.u32 %v746_v20, 16  ;;  %v749_v35 = vld [vmem:[%s3087_s30 + $0x1c] sm:$0xf] }
  0x1b   : > { %2918 = vmatprep.subr.msk.bf16.mxu0 %vm308_vm0, %v2566_v9  ;;  %v778_v33 = vrot.slane %v776_v22, 4  ;;  %v781_v34 = vrot.slane %v779_v23, 5  ;;  %v744_v36 = vld [vmem:[%s3087_s30 + $0x8] sm:$0x1]  ;;  %v3155_v37 = vrot.slane %v785_v25, 5  ;;  %v791_v38 = vrot.slane %v789_v26, 4 }
  0x1c   : > { %v802_v39 = vrot.slane %v800_v27, 4  ;;  %v805_v40 = vrot.slane %v803_v28, 5  ;;  %v747_v41 = vld [vmem:[%s3087_s30 + $0x14] sm:$0x1]  ;;  %v3160_v42 = vrot.slane %v809_v29, 5  ;;  %v815_v43 = vrot.slane %v813_v30, 4 }
  0x1d   : > { %v824_v44 = vshrl.u32 %v748_v32, 16  ;;  %v827_v45 = vshll.u32 %v748_v32, 16  ;;  %v833_v46 = vshll.u32 %v749_v35, 16  ;;  %v837_v47 = vshrl.u32 %v749_v35, 16  ;;  %v751_v48 = vld [vmem:[%s3087_s30 + $0x24] sm:$0xf] }
  0x1e   : > { %v782_v49 = vor.u32 %v781_v34, %v778_v33  ;;  %v792_v50 = vor.u32 %v791_v38, %v3155_v37  ;;  %v795_v51 = vshll.u32 %v744_v36, 16  ;;  %v819_v52 = vshll.u32 %v747_v41, 16  ;;  %v752_v53 = vld [vmem:[%s3087_s30 + $0x28] sm:$0xf]  ;;  %v750_v62 = vld [vmem:[%s3087_s30 + $0x20] sm:$0x1] }
  0x1f   : > { %2764 = vmatmul.mubr.msk.bf16.gmra.mrb[4].mxu1 %vm283_vm1, %v3119_v14  ;;  %v806_v54 = vor.u32 %v805_v40, %v802_v39  ;;  %v816_v55 = vor.u32 %v815_v43, %v3160_v42  ;;  %v826_v56 = vrot.slane %v824_v44, 4  ;;  %v829_v57 = vrot.slane %v827_v45, 5  ;;  %v755_v9 = vld [vmem:[%s3087_s30 + $0x34] sm:$0xf]  ;;  %v753_v17 = vld [vmem:[%s3087_s30 + $0x2c] sm:$0x1] }
  0x20   : > { %2769 = vmatprep.mubr.msk.bf16.mxu1 %vm283_vm1, %v2967_v10  ;;  %2756 = vmatmul.mubr.msk.bf16.gmra.mrb[4].mxu0 %vm283_vm1, %v2971_v15  ;;  %v3172_v58 = vrot.slane %v833_v46, 5  ;;  %v839_v59 = vrot.slane %v837_v47, 4  ;;  %v848_v60 = vshrl.u32 %v751_v48, 16  ;;  %v851_v61 = vshll.u32 %v751_v48, 16  ;;  %v2972_v25 = vld [vmem:[%s3087_s30 + $0x60] sm:$0xff]   ;;  %v2973_v48 = vld [vmem:[%s3087_s30 + $0x6c] sm:$0xff]  }
  0x21   : > { %2787 = vmatprep.mubr.msk.bf16.mxu0 %vm283_vm1, %v2970_v13  ;;  %v857_v63 = vshll.u32 %v752_v53, 16  ;;  %v861_v0 = vshrl.u32 %v752_v53, 16  ;;  %v783_v1 = vrot.slane %v782_v49, 4  ;;  %v793_v2 = vrot.slane %v792_v50, 4  ;;  %v758_v35 = vld [vmem:[%s3087_s30 + $0x40] sm:$0xf] }
  0x22   : > { %v797_v3 = vrot.slane %v795_v51, 5  ;;  %v807_v5 = vrot.slane %v806_v54, 4  ;;  %v821_v7 = vrot.slane %v819_v52, 5  ;;  %v830_v8 = vor.u32 %v829_v57, %v826_v56  ;;  %v756_v40 = vld [vmem:[%s3087_s30 + $0x38] sm:$0x1] }
  0x23   : > { %v840_v11 = vor.u32 %v839_v59, %v3172_v58  ;;  %v853_v16 = vrot.slane %v851_v61, 5  ;;  %v3186_v18 = vrot.slane %v857_v63, 5  ;;  %v881_v22 = vshll.u32 %v755_v9, 16  ;;  %v760_v47 = vld [vmem:[%s3087_s30 + $0x48] sm:$0xf] }
  0x24   : > { %v885_v23 = vshrl.u32 %v755_v9, 16  ;;  %v788_v26 = vsel %vm3180_vm4, %v783_v1, %v3155_v37  ;;  %v798_v27 = vsel %vm3180_vm4, %v793_v2, %v797_v3  ;;  %v812_v28 = vsel %vm3180_vm4, %v807_v5, %v3160_v42  ;;  %v761_v53 = vld [vmem:[%s3087_s30 + $0x4c] sm:$0xf]  ;;  %v1550_v10 = vld [vmem:[%s3087_s30 + $0x64] sm:$0xf] }
  0x25   : > { %v831_v29 = vrot.slane %v830_v8, 4  ;;  %v841_v32 = vrot.slane %v840_v11, 4  ;;  %v867_v34 = vshll.u32 %v753_v17, 16  ;;  %v3210_v41 = vrot.slane %v881_v22, 5 }
  0x26   : > { %v2550_v44 = vcombine.low %v788_v26, %v798_v27  ;;  %v905_v45 = vshll.u32 %v758_v35, 16  ;;  %v909_v46 = vshrl.u32 %v758_v35, 16  ;;  %v891_v57 = vshll.u32 %v756_v40, 16  ;;  %v766_v35 = vld [vmem:[%s3087_s30 + $0x60] sm:$0xf] }
  0x27   : > { %2770 = vmatmul.mubr.msk.bf16.vlgmr.msra.gmra.mrb[8].mxu1 %vm283_vm1, %v2970_v13  ;;  %v843_v13 = vshll.u32 %v750_v62, 16  ;;  %v836_v50 = vsel %vm3180_vm4, %v831_v29, %v3172_v58  ;;  %v869_v52 = vrot.slane %v867_v34, 5  ;;  %v920_v62 = vshrl.u32 %v760_v47, 16  ;;  %v759_v58 = vld [vmem:[%s3087_s30 + $0x44] sm:$0x1] }
  0x28   : > { %2804 = vmatpush3.bf16.msra.mxu1 %v1018_v19  ;;  %2773 = vmatprep.mubr.msk.bf16.mxu1 %vm283_vm1, %v2971_v15  ;;  %v863_v19 = vrot.slane %v861_v0, 4  ;;  %v3224_v63 = vrot.slane %v905_v45, 5  ;;  %v911_v0 = vrot.slane %v909_v46, 4  ;;  %v923_v1 = vshll.u32 %v760_v47, 16  ;;  %v3265_v40 = vld [vmem:[%s3715_s1 + $0x10] sm:$0x3] }
  0x29   : > { %2788 = vmatmul.mubr.msk.bf16.vlgmr.msra.gmra.mrb[8].mxu0 %vm283_vm1, %v2971_v15  ;;  %2919 = vmatprep.subr.msk.bf16.mxu1 %vm308_vm0, %v3138_v24  ;;  %v850_v15 = vrot.slane %v848_v60, 4  ;;  %v845_v33 = vrot.slane %v843_v13, 5  ;;  %v929_v2 = vshll.u32 %v761_v53, 16  ;;  %v1378_v3 = vsel %vm308_vm0, %v3138_v24, 0  ;;  %v764_v13 = vld [vmem:[%s3087_s30 + $0x58] sm:$0xf] }
  0x2a   : > { %2822 = vmatpush3.bf16.msra.mxu0 %v1198_v21  ;;  %2791 = vmatprep.mubr.msk.bf16.mxu0 %vm283_vm1, %v3090_v4  ;;  %v864_v37 = vor.u32 %v863_v19, %v3186_v18  ;;  %v933_v5 = vshrl.u32 %v761_v53, 16  ;;  %v893_v11 = vrot.slane %v891_v57, 5  ;;  %v915_v24 = vshll.u32 %v759_v58, 16  ;;  %v768_v58 = vld [vmem:[%s3087_s30 + $0x68] sm:$0x1] }
  0x2b   : > { %2920 = vmatprep.subr.msk.bf16.mxu0 %vm308_vm0, %v3145_v31  ;;  %v854_v36 = vor.u32 %v853_v16, %v850_v15  ;;  %v846_v51 = vsel %vm3180_vm4, %v841_v32, %v845_v33  ;;  %v922_v17 = vrot.slane %v920_v62, 4  ;;  %v912_v19 = vor.u32 %v911_v0, %v3224_v63 }
  0x2c   : > { %v953_v26 = vshll.u32 %v764_v13, 16  ;;  %v957_v27 = vshrl.u32 %v764_v13, 16  ;;  %v1689_v29 = vsel %vm308_vm0, %v3145_v31, 0  ;;  %v917_v34 = vrot.slane %v915_v24, 5 }
  0x2d   : > { %v855_v54 = vrot.slane %v854_v36, 4  ;;  %v767_v36 = vld [vmem:[%s3087_s30 + $0x64] sm:$0xf]  ;;  %v913_v31 = vrot.slane %v912_v19, 4  ;;  %v1166_v45 = vshrl.u32 %v766_v35, 16  ;;  %v1169_v46 = vshll.u32 %v766_v35, 16 }
  0x2e   : > { %v1175_v47 = vshll.u32 %v767_v36, 16 }
  0x2f   : > { %2774 = vmatmul.mubr.msk.bf16.gmra.mrb[12].mxu1 %vm283_vm1, %v3090_v4  ;;  %v754_v4 = vld [vmem:[%s3087_s30 + $0x30] sm:$0xf] }
  0x30   : > { %2777 = vmatprep.mubr.msk.bf16.mxu1 %vm283_vm1, %v3096_v6  ;;  %v872_v20 = vshrl.u32 %v754_v4, 16  ;;  %v875_v21 = vshll.u32 %v754_v4, 16  ;;  %v3229_v4 = vcombine.low %v836_v50, %v846_v51  ;;  %v918_v51 = vsel %vm3180_vm4, %v913_v31, %v917_v34  ;;  %v1530_v31 = vld [vmem:[%s3087_s30 + $0x14] sm:$0x1] }
  0x31   : > { %2792 = vmatmul.mubr.msk.bf16.gmra.mrb[12].mxu0 %vm283_vm1, %v3096_v6  ;;  %v817_v6 = vrot.slane %v816_v55, 4  ;;  %v865_v55 = vrot.slane %v864_v37, 4 }
  0x32   : > { %2795 = vmatprep.mubr.msk.bf16.mxu0 %vm283_vm1, %v3111_v12  ;;  %v874_v38 = vrot.slane %v872_v20, 4  ;;  %v877_v39 = vrot.slane %v875_v21, 5  ;;  %v925_v20 = vrot.slane %v923_v1, 5  ;;  %v3240_v21 = vrot.slane %v929_v2, 5  ;;  %v1526_v1 = vld [vmem:[%s3087_s30 + $0x4] sm:$0xf] }
  0x33   : > { %v822_v30 = vsel %vm3180_vm4, %v817_v6, %v821_v7  ;;  %v763_v6 = vld [vmem:[%s3087_s30 + $0x54] sm:$0xf]  ;;  %v860_v7 = vsel %vm3180_vm4, %v855_v54, %v3186_v18  ;;  %v870_v8 = vsel %vm3180_vm4, %v865_v55, %v869_v52  ;;  %v935_v18 = vrot.slane %v933_v5, 4 }
  0x34   : > { %v2551_v49 = vcombine.low %v812_v28, %v822_v30  ;;  %v878_v56 = vor.u32 %v877_v39, %v874_v38  ;;  %v944_v22 = vshrl.u32 %v763_v6, 16  ;;  %v3243_v28 = vcombine.low %v860_v7, %v870_v8 }
  0x35   : > { %v926_v37 = vor.u32 %v925_v20, %v922_v17 }
  0x36   : > { %v879_v9 = vrot.slane %v878_v56, 4  ;;  %v946_v39 = vrot.slane %v944_v22, 4 }
  0x37   : > { %2778 = vmatmul.mubr.msk.bf16.gmra.mrb[16].mxu1 %vm283_vm1, %v3111_v12  ;;  %v757_v12 = vld [vmem:[%s3087_s30 + $0x3c] sm:$0xf]  ;;  %v927_v52 = vrot.slane %v926_v37, 4 }
  0x38   : > { %2781 = vmatprep.mubr.msk.bf16.mxu1 %vm283_vm1, %v3119_v14  ;;  %v896_v42 = vshrl.u32 %v757_v12, 16  ;;  %v899_v43 = vshll.u32 %v757_v12, 16  ;;  %v3250_v12 = vld [vmem:[%s3715_s1 + $0xa] sm:$0x3]  ;;  %v884_v30 = vsel %vm3180_vm4, %v879_v9, %v3210_v41  ;;  %v1185_v9 = vshll.u32 %v768_v58, 16 }
  0x39   : > { %2796 = vmatmul.mubr.msk.bf16.gmra.mrb[16].mxu0 %vm283_vm1, %v3119_v14  ;;  %v887_v14 = vrot.slane %v885_v23, 4  ;;  %v762_v23 = vld [vmem:[%s3087_s30 + $0x50] sm:$0x1]  ;;  %v932_v0 = vsel %vm3180_vm4, %v927_v52, %v3240_v21  ;;  %v769_v58 = vld [vmem:[%s3087_s30 + $0x6c] sm:$0xf] }
  0x3a   : > { %2799 = vmatprep.mubr.msk.bf16.mxu0 %vm283_vm1, %v2972_v25  ;;  %v898_v60 = vrot.slane %v896_v42, 4  ;;  %v901_v61 = vrot.slane %v899_v43, 5  ;;  %v939_v38 = vshll.u32 %v762_v23, 16  ;;  %v955_v42 = vrot.slane %v953_v26, 5 }
  0x3b   : > { %v888_v59 = vor.u32 %v887_v14, %v3210_v41  ;;  %v936_v41 = vor.u32 %v935_v18, %v3240_v21  ;;  %v959_v43 = vrot.slane %v957_v27, 4  ;;  %v1187_v21 = vrot.slane %v1185_v9, 5  ;;  %v1541_v9 = vld [vmem:[%s3087_s30 + $0x40] sm:$0xf] }
  0x3c   : > { %v902_v16 = vor.u32 %v901_v61, %v898_v60  ;;  %v941_v53 = vrot.slane %v939_v38, 5  ;;  %v1171_v60 = vrot.slane %v1169_v46, 5  ;;  %v1177_v61 = vrot.slane %v1175_v47, 5  ;;  %v1531_v38 = vld [vmem:[%s3087_s30 + $0x18] sm:$0xe] }
  0x3d   : > { %v889_v15 = vrot.slane %v888_v59, 4  ;;  %v937_v54 = vrot.slane %v936_v41, 4  ;;  %v960_v56 = vor.u32 %v959_v43, %v955_v42  ;;  %v1168_v59 = vrot.slane %v1166_v45, 4 }
  0x3e   : > { %v903_v33 = vrot.slane %v902_v16, 4  ;;  %v1527_v16 = vld [vmem:[%s3087_s30 + $0x8] sm:$0x1]  ;;  %v2588_v45 = vrot.slane %v1531_v38, 9 }
  0x3f   : > { %2782 = vmatmul.mubr.msk.bf16.gmra.mrb[20].mxu1 %vm283_vm1, %v2972_v25  ;;  %v947_v25 = vshll.u32 %v763_v6, 16  ;;  %v894_v32 = vsel %vm3180_vm4, %v889_v15, %v893_v11  ;;  %v942_v2 = vsel %vm3180_vm4, %v937_v54, %v941_v53  ;;  %v961_v5 = vrot.slane %v960_v56, 4  ;;  %v1525_v15 = vld [vmem:[%s3087_s30] sm:$0xe]  ;;  %v1536_v56 = vld [vmem:[%s3087_s30 + $0x2c] sm:$0x1] }
  0x40   : > { %2805 = vmatprep.mubr.msk.bf16.mxu1 %vm283_vm1, %v2550_v44  ;;  %v765_v44 = vld [vmem:[%s3087_s30 + $0x5c] sm:$0x1]  ;;  %v908_v50 = vsel %vm3180_vm4, %v903_v33, %v3224_v63  ;;  %v1172_v7 = vor.u32 %v1171_v60, %v1168_v59  ;;  %v1584_v11 = vrot.slane %v1526_v1, 5  ;;  %v3301_v13 = vcombine.low %v932_v0, %v942_v2  ;;  %v1537_v59 = vld [vmem:[%s3087_s30 + $0x30] sm:$0xe] }
  0x41   : > { %2800 = vmatmul.mubr.msk.bf16.gmra.mrb[20].mxu0 %vm283_vm1, %v2973_v48  ;;  %v949_v14 = vrot.slane %v947_v25, 5  ;;  %v1179_v48 = vshrl.u32 %v767_v36, 16  ;;  %v963_v57 = vshll.u32 %v765_v44, 16  ;;  %v3289_v63 = vcombine.low %v908_v50, %v918_v51  ;;  %v1529_v25 = vld [vmem:[%s3087_s30 + $0x10] sm:$0xf] }
  0x42   : > { %2823 = vmatprep.mubr.msk.bf16.mxu0 %vm283_vm1, %v2551_v49  ;;  %v1173_v19 = vrot.slane %v1172_v7, 4  ;;  %v2586_v22 = vrot.slane %v1525_v15, 9  ;;  %v1586_v23 = vrot.slane %v1584_v11, 4  ;;  %v1587_v18 = vrot.slane %v1527_v16, 5  ;;  %v1528_v36 = vld [vmem:[%s3087_s30 + $0xc] sm:$0xe] }
  0x43   : > { %v950_v55 = vor.u32 %v949_v14, %v946_v39  ;;  %v1181_v62 = vrot.slane %v1179_v48, 4  ;;  %v965_v6 = vrot.slane %v963_v57, 5  ;;  %v1591_v33 = vrot.slane %v1529_v25, 5  ;;  %v1533_v39 = vld [vmem:[%s3087_s30 + $0x20] sm:$0x1] }
  0x44   : > { %v1585_v34 = vsel %vm3316_vm7, %v2586_v22, %v1584_v11  ;;  %v1588_v35 = vsel %vm3316_vm7, %v1586_v23, %v1587_v18  ;;  %v1594_v44 = vrot.slane %v1530_v31, 5  ;;  %v1601_v47 = vrot.slane %v1533_v39, 5  ;;  %v1535_v48 = vld [vmem:[%s3087_s30 + $0x28] sm:$0xf]  ;;  %v1538_v50 = vld [vmem:[%s3087_s30 + $0x34] sm:$0xf] }
  0x45   : > { %v1182_v8 = vor.u32 %v1181_v62, %v1177_v61  ;;  %v966_v17 = vsel %vm3180_vm4, %v961_v5, %v965_v6  ;;  %v2595_v14 = vcombine.low %v1585_v34, %v1588_v35  ;;  %v1593_v43 = vrot.slane %v1591_v33, 4  ;;  %v1539_v60 = vld [vmem:[%s3087_s30 + $0x38] sm:$0x1]  ;;  %v770_v0 = vld [vmem:[%s3087_s30 + $0x70] sm:$0xf] }
  0x46   : > { %v1605_v53 = vrot.slane %v1535_v48, 5  ;;  %v1612_v57 = vrot.slane %v1538_v50, 5  ;;  %v1608_v5 = vrot.slane %v1536_v56, 5  ;;  %v2021_v6 = vsel %vm308_vm0, %v3265_v40, 0  ;;  %v1542_v22 = vld [vmem:[%s3087_s30 + $0x44] sm:$0x1] }
  0x47   : > { %2806 = vmatmul.mubr.msk.bf16.vlgmr.msra.gmra.mrb[24].mxu1 %vm283_vm1, %v2551_v49  ;;  %v3275_v49 = vcombine.low %v884_v30, %v894_v32  ;;  %v1183_v20 = vrot.slane %v1182_v8, 4  ;;  %v1178_v30 = vsel %vm3180_vm4, %v1173_v19, %v1177_v61  ;;  %v1595_v52 = vsel %vm3316_vm7, %v1593_v43, %v1594_v44  ;;  %v1543_v23 = vld [vmem:[%s3087_s30 + $0x48] sm:$0xe]  ;;  %v771_v35 = vld [vmem:[%s3087_s30 + $0x74] sm:$0x1] }
  0x48   : > { %2840 = vmatpush3.bf16.msra.mxu1 %v1378_v3  ;;  %2809 = vmatprep.mubr.msk.bf16.mxu1 %vm283_vm1, %v3229_v4  ;;  %v951_v3 = vrot.slane %v950_v55, 4  ;;  %v1534_v55 = vld [vmem:[%s3087_s30 + $0x24] sm:$0xe]  ;;  %v1855_v61 = vsel %vm308_vm0, %v3250_v12, 0  ;;  %v2590_v7 = vrot.slane %v1537_v59, 9  ;;  %v1614_v8 = vrot.slane %v1612_v57, 4 }
  0x49   : > { %2824 = vmatmul.mubr.msk.bf16.vlgmr.msra.gmra.mrb[24].mxu0 %vm283_vm1, %v3229_v4  ;;  %2921 = vmatprep.subr.msk.bf16.mxu1 %vm308_vm0, %v3250_v12  ;;  %v1188_v32 = vsel %vm3180_vm4, %v1183_v20, %v1187_v21  ;;  %v2589_v2 = vrot.slane %v1534_v55, 9  ;;  %v1615_v12 = vrot.slane %v1539_v60, 5  ;;  %v1346_v11 = vshrl.u32 %v769_v58, 16  ;;  %v1547_v43 = vld [vmem:[%s3087_s30 + $0x58] sm:$0xf] }
  0x4a   : > { %2858 = vmatpush3.bf16.msra.mxu0 %v1689_v29  ;;  %2827 = vmatprep.mubr.msk.bf16.mxu0 %vm283_vm1, %v3243_v28  ;;  %v956_v24 = vsel %vm3180_vm4, %v951_v3, %v955_v42  ;;  %v1532_v29 = vld [vmem:[%s3087_s30 + $0x1c] sm:$0xf]  ;;  %v3337_v41 = vcombine.low %v1178_v30, %v1188_v32  ;;  %v2587_v42 = vrot.slane %v1528_v36, 9  ;;  %v1607_v3 = vrot.slane %v1605_v53, 4 }
  0x4b   : > { %2922 = vmatprep.subr.msk.bf16.mxu0 %vm308_vm0, %v3265_v40  ;;  %v3314_v26 = vcombine.low %v956_v24, %v966_v17  ;;  %v1598_v37 = vrot.slane %v1532_v29, 5  ;;  %v1349_v15 = vshll.u32 %v769_v58, 16  ;;  %v1355_v16 = vshll.u32 %v770_v0, 16  ;;  %v1544_v17 = vld [vmem:[%s3087_s30 + $0x4c] sm:$0xf] }
  0x4c   : > { %v1592_v51 = vsel %vm3316_vm7, %v2587_v42, %v1591_v33  ;;  %v1359_v24 = vshrl.u32 %v770_v0, 16  ;;  %v1609_v40 = vsel %vm3316_vm7, %v1607_v3, %v1608_v5  ;;  %v1619_v19 = vrot.slane %v1541_v9, 5  ;;  %v1545_v33 = vld [vmem:[%s3087_s30 + $0x50] sm:$0x1]  ;;  %v1549_v5 = vld [vmem:[%s3087_s30 + $0x60] sm:$0xe] }
  0x4d   : > { %v1600_v46 = vrot.slane %v1598_v37, 4  ;;  %v1599_v54 = vsel %vm3316_vm7, %v2588_v45, %v1598_v37  ;;  %v3362_v62 = vcombine.low %v1592_v51, %v1595_v52  ;;  %v1613_v20 = vsel %vm3316_vm7, %v2590_v7, %v1612_v57  ;;  %v1546_v51 = vld [vmem:[%s3087_s30 + $0x54] sm:$0xe]  ;;  %v1548_v52 = vld [vmem:[%s3087_s30 + $0x5c] sm:$0x1] }
  0x4e   : > { %v1616_v21 = vsel %vm3316_vm7, %v1614_v8, %v1615_v12  ;;  %v1626_v18 = vrot.slane %v1544_v17, 5  ;;  %v1348_v25 = vrot.slane %v1346_v11, 4  ;;  %v1351_v29 = vrot.slane %v1349_v15, 5  ;;  %v1552_v9 = vld [vmem:[%s3087_s30 + $0x6c] sm:$0xe] }
  0x4f   : > { %2810 = vmatmul.mubr.msk.bf16.gmra.mrb[28].mxu1 %vm283_vm1, %v3243_v28  ;;  %v1357_v30 = vrot.slane %v1355_v16, 5  ;;  %v1361_v32 = vrot.slane %v1359_v24, 4  ;;  %v2599_v36 = vcombine.low %v1613_v20, %v1616_v21  ;;  %v1621_v37 = vrot.slane %v1619_v19, 4  ;;  %v1554_v11 = vld [vmem:[%s3087_s30 + $0x74] sm:$0x1] }
  0x50   : > { %2813 = vmatprep.mubr.msk.bf16.mxu1 %vm283_vm1, %v3275_v49  ;;  %v1622_v38 = vrot.slane %v1542_v22, 5  ;;  %v2592_v39 = vrot.slane %v1543_v23, 9  ;;  %v1629_v42 = vrot.slane %v1545_v33, 5  ;;  %v1352_v44 = vor.u32 %v1351_v29, %v1348_v25 }
  0x51   : > { %2828 = vmatmul.mubr.msk.bf16.gmra.mrb[28].mxu0 %vm283_vm1, %v3275_v49  ;;  %v1362_v45 = vor.u32 %v1361_v32, %v1357_v30  ;;  %v1633_v48 = vrot.slane %v1547_v43, 5  ;;  %v2593_v57 = vrot.slane %v1546_v51, 9  ;;  %v1636_v60 = vrot.slane %v1548_v52, 5 }
  0x52   : > { %2831 = vmatprep.mubr.msk.bf16.mxu0 %vm283_vm1, %v3289_v63  ;;  %v1627_v50 = vsel %vm3316_vm7, %v2592_v39, %v1626_v18  ;;  %v1841_v3 = vrot.slane %v1550_v10, 5  ;;  %v2622_v24 = vrot.slane %v1552_v9, 9 }
  0x53   : > { %v1635_v59 = vrot.slane %v1633_v48, 4  ;;  %v1634_v0 = vsel %vm3316_vm7, %v2593_v57, %v1633_v48 }
  0x54   : > { %v1843_v7 = vrot.slane %v1841_v3, 4 }
  0x57   : > { %2814 = vmatmul.mubr.msk.bf16.gmra.mrb[32].mxu1 %vm283_vm1, %v3289_v63 }
  0x58   : > { %2817 = vmatprep.mubr.msk.bf16.mxu1 %vm283_vm1, %v3301_v13 }
  0x59   : > { %2832 = vmatmul.mubr.msk.bf16.gmra.mrb[32].mxu0 %vm283_vm1, %v3301_v13 }
  0x5a   : > { %2835 = vmatprep.mubr.msk.bf16.mxu0 %vm283_vm1, %v3314_v26 }
  0x5f   : > { %2818 = vmatmul.mubr.msk.bf16.gmra.mrb[36].mxu1 %vm283_vm1, %v3314_v26 }
  0x60   : > { %2841 = vmatprep.mubr.msk.bf16.mxu1 %vm283_vm1, %v3229_v4  ;;  %v1602_v4 = vsel %vm3316_vm7, %v1600_v46, %v1601_v47  ;;  %v1365_v46 = vshll.u32 %v771_v35, 16 }
  0x61   : > { %2836 = vmatmul.mubr.msk.bf16.gmra.mrb[36].mxu0 %vm283_vm1, %v3337_v41  ;;  %v3366_v1 = vcombine.low %v1599_v54, %v1602_v4  ;;  %v1363_v54 = vrot.slane %v1362_v45, 4 }
  0x62   : > { %2859 = vmatprep.mubr.msk.bf16.mxu0 %vm283_vm1, %v2595_v14  ;;  %v1628_v14 = vrot.slane %v1626_v18, 4  ;;  %v1367_v4 = vrot.slane %v1365_v46, 5 }
  0x64   : > { %v1368_v58 = vsel %vm3180_vm4, %v1363_v54, %v1367_v4 }
  0x67   : > { %2842 = vmatmul.mubr.msk.bf16.vlgmr.msra.gmra.mrb[40].mxu1 %vm283_vm1, %v3243_v28  ;;  %v1606_v28 = vsel %vm3316_vm7, %v2589_v2, %v1605_v53  ;;  %v1353_v53 = vrot.slane %v1352_v44, 4 }
  0x68   : > { %2876 = vmatpush3.bf16.msra.mxu1 %v1855_v61  ;;  %2845 = vmatprep.mubr.msk.bf16.mxu1 %vm283_vm1, %v3275_v49  ;;  %v1540_v49 = vld [vmem:[%s3087_s30 + $0x3c] sm:$0xe]  ;;  %v2598_v34 = vcombine.low %v1606_v28, %v1609_v40  ;;  %v2010_v28 = vrot.slane %v1554_v11, 5 }
  0x69   : > { %2860 = vmatmul.mubr.msk.bf16.vlgmr.msra.gmra.mrb[40].mxu0 %vm283_vm1, %v3362_v62  ;;  %v2591_v31 = vrot.slane %v1540_v49, 9  ;;  %v1358_v61 = vsel %vm3180_vm4, %v1353_v53, %v1357_v30 }
  0x6a   : > { %2894 = vmatpush3.bf16.msra.mxu0 %v2021_v6  ;;  %2863 = vmatprep.mubr.msk.bf16.mxu0 %vm283_vm1, %v3366_v1  ;;  %v1553_v6 = vld [vmem:[%s3087_s30 + $0x70] sm:$0xf] }
  0x6b   : > { %v1620_v47 = vsel %vm3316_vm7, %v2591_v31, %v1619_v19  ;;  %v2007_v12 = vrot.slane %v1553_v6, 5 }
  0x6d   : > { %v2009_v17 = vrot.slane %v2007_v12, 4  ;;  %v2008_v49 = vsel %vm3316_vm7, %v2622_v24, %v2007_v12 }
  0x6f   : > { %2846 = vmatmul.mubr.msk.bf16.gmra.mrb[44].mxu1 %vm283_vm1, %v3289_v63  ;;  %v1623_v63 = vsel %vm3316_vm7, %v1621_v37, %v1622_v38  ;;  %v2011_v19 = vsel %vm3316_vm7, %v2009_v17, %v2010_v28 }
  0x70   : > { %2849 = vmatprep.mubr.msk.bf16.mxu1 %vm283_vm1, %v3301_v13  ;;  %v1630_v13 = vsel %vm3316_vm7, %v1628_v14, %v1629_v42  ;;  %v2600_v55 = vcombine.low %v1620_v47, %v1623_v63  ;;  %v2624_v20 = vcombine.low %v2008_v49, %v2011_v19 }
  0x71   : > { %2864 = vmatmul.mubr.msk.bf16.gmra.mrb[44].mxu0 %vm283_vm1, %v2598_v34  ;;  %v2601_v56 = vcombine.low %v1627_v50, %v1630_v13 }
  0x72   : > { %2867 = vmatprep.mubr.msk.bf16.mxu0 %vm283_vm1, %v2599_v36 }
  0x77   : > { %2850 = vmatmul.mubr.msk.bf16.gmra.mrb[48].mxu1 %vm283_vm1, %v3314_v26  ;;  %v1637_v26 = vsel %vm3316_vm7, %v1635_v59, %v1636_v60 }
  0x78   : > { %2853 = vmatprep.mubr.msk.bf16.mxu1 %vm283_vm1, %v3337_v41  ;;  %v2577_v41 = vcombine.low %v1358_v61, %v1368_v58  ;;  %v2602_v2 = vcombine.low %v1634_v0, %v1637_v26 }
  0x79   : > { %2868 = vmatmul.mubr.msk.bf16.gmra.mrb[48].mxu0 %vm283_vm1, %v2600_v55 }
  0x7a   : > { %2871 = vmatprep.mubr.msk.bf16.mxu0 %vm283_vm1, %v2601_v56 }
  0x7f   : > { %2854 = vmatmul.mubr.msk.bf16.gmra.mrb[52].mxu1 %vm283_vm1, %v2577_v41 }
  0x80   : > { %2877 = vmatprep.mubr.msk.bf16.mxu1 %vm283_vm1, %v3362_v62  ;;  %v1551_v62 = vld [vmem:[%s3087_s30 + $0x68] sm:$0x1] }
  0x81   : > { %2872 = vmatmul.mubr.msk.bf16.gmra.mrb[52].mxu0 %vm283_vm1, %v2602_v2  ;;  %v1844_v8 = vrot.slane %v1551_v62, 5 }
  0x82   : > { %2895 = vmatprep.mubr.msk.bf16.mxu0 %vm283_vm1, %v3366_v1 }
  0x83   : > { %v1845_v16 = vsel %vm3316_vm7, %v1843_v7, %v1844_v8 }
  0x87   : > { %2878 = vmatmul.mubr.msk.bf16.vlgmr.msra.gmra.mrb[56].mxu1 %vm283_vm1, %v3366_v1  ;;  %v2611_v1 = vrot.slane %v1549_v5, 9 }
  0x88   : > { %2881 = vmatprep.mubr.msk.bf16.mxu1 %vm283_vm1, %v2598_v34 }
  0x89   : > { %2896 = vmatmul.mubr.msk.bf16.vlgmr.msra.gmra.mrb[56].mxu0 %vm283_vm1, %v2598_v34  ;;  %v1842_v15 = vsel %vm3316_vm7, %v2611_v1, %v1841_v3 }
  0x8a   : > { %2899 = vmatprep.mubr.msk.bf16.mxu0 %vm283_vm1, %v2599_v36  ;;  %v2613_v40 = vcombine.low %v1842_v15, %v1845_v16 }
  0x8f   : > { %2882 = vmatmul.mubr.msk.bf16.gmra.mrb[60].mxu1 %vm283_vm1, %v2599_v36 }
  0x90   : > { %2885 = vmatprep.mubr.msk.bf16.mxu1 %vm283_vm1, %v2600_v55 }
  0x91   : > { %2900 = vmatmul.mubr.msk.bf16.gmra.mrb[60].mxu0 %vm283_vm1, %v2600_v55 }
  0x92   : > { %2903 = vmatprep.mubr.msk.bf16.mxu0 %vm283_vm1, %v2601_v56 }
  0x97   : > { %2886 = vmatmul.mubr.msk.bf16.gmra.mrb[64].mxu1 %vm283_vm1, %v2601_v56 }
  0x98   : > { %2889 = vmatprep.mubr.msk.bf16.mxu1 %vm283_vm1, %v2602_v2 }
  0x99   : > { %2904 = vmatmul.mubr.msk.bf16.gmra.mrb[64].mxu0 %vm283_vm1, %v2602_v2 }
  0x9a   : > { %2907 = vmatprep.mubr.msk.bf16.mxu0 %vm283_vm1, %v2613_v40 }
  0x9f   : > { %2890 = vmatmul.mubr.msk.bf16.gmra.mrb[68].mxu1 %vm283_vm1, %v2613_v40 }
  0xa1   : > { %2908 = vmatmul.mubr.msk.bf16.gmra.mrb[68].mxu0 %vm283_vm1, %v2624_v20 }
  0xea   : > { %v2761_v21 = vpop.f32.mrb[0].mxu1 }
  0xeb   : > { %420 = vst.msk [vmem:[#allocation2 + $0x50] sm:$0xff] %vm409_vm8, %v2761_v21  ;;  %v378_v22 = vpop.f32.mrb[1].mxu1  ;;  %v2753_v18 = vpop.f32.mrb[0].mxu0 }
  0xec   : > { %418 = vst.msk [vmem:[#allocation2 + $0x40] sm:$0xff] %vm409_vm8, %v378_v22  ;;  %v2762_v23 = vpop.f32.mrb[2].mxu1  ;;  %412 = vst.msk [vmem:[#allocation2 + $0x10] sm:$0xff] %vm409_vm8, %v2753_v18  ;;  %v346_v27 = vpop.f32.mrb[1].mxu0 }
  0xed   : > { %421 = vst.msk [vmem:[#allocation2 + $0x58] sm:$0xff] %vm409_vm8, %v2762_v23  ;;  %v381_v25 = vpop.f32.mrb[3].mxu1  ;;  %410 = vst.msk [vmem:[#allocation2] sm:$0xff] %vm409_vm8, %v346_v27  ;;  %v2754_v29 = vpop.f32.mrb[2].mxu0 }
  0xee   : > { %419 = vst.msk [vmem:[#allocation2 + $0x48] sm:$0xff] %vm409_vm8, %v381_v25  ;;  %413 = vst.msk [vmem:[#allocation2 + $0x18] sm:$0xff] %vm409_vm8, %v2754_v29  ;;  %v349_v30 = vpop.f32.mrb[3].mxu0 }
  0xef   : > { %411 = vst.msk [vmem:[#allocation2 + $0x8] sm:$0xff] %vm409_vm8, %v349_v30 }
  0xf2   : > { %v2765_v32 = vpop.f32.mrb[4].mxu1  ;;  %v546_v24 = vld [vmem:[#allocation2 + $0x50] sm:$0xff] }
  0xf3   : > { %424 = vst.msk [vmem:[#allocation2 + $0x70] sm:$0xff] %vm409_vm8, %v2765_v32  ;;  %v394_v33 = vpop.f32.mrb[5].mxu1  ;;  %v2757_v35 = vpop.f32.mrb[4].mxu0  ;;  %v538_v39 = vld [vmem:[#allocation2 + $0x10] sm:$0xff]  ;;  %v544_v40 = vld [vmem:[#allocation2 + $0x40] sm:$0xff] }
  0xf4   : > { %422 = vst.msk [vmem:[#allocation2 + $0x60] sm:$0xff] %vm409_vm8, %v394_v33  ;;  %v2766_v34 = vpop.f32.mrb[6].mxu1  ;;  %416 = vst.msk [vmem:[#allocation2 + $0x30] sm:$0xff] %vm409_vm8, %v2757_v35  ;;  %v362_v31 = vpop.f32.mrb[5].mxu0  ;;  %v536_v14 = vld [vmem:[#allocation2] sm:$0xff]  ;;  %v547_v21 = vld [vmem:[#allocation2 + $0x58] sm:$0xff] }
  0xf5   : > { %425 = vst.msk [vmem:[#allocation2 + $0x78] sm:$0xff] %vm409_vm8, %v2766_v34  ;;  %v397_v36 = vpop.f32.mrb[7].mxu1  ;;  %414 = vst.msk [vmem:[#allocation2 + $0x20] sm:$0xff] %vm409_vm8, %v362_v31  ;;  %v2758_v37 = vpop.f32.mrb[6].mxu0  ;;  %v539_v43 = vld [vmem:[#allocation2 + $0x18] sm:$0xff]  ;;  %v545_v29 = vld [vmem:[#allocation2 + $0x48] sm:$0xff] }
  0xf6   : > { %423 = vst.msk [vmem:[#allocation2 + $0x68] sm:$0xff] %vm409_vm8, %v397_v36  ;;  %417 = vst.msk [vmem:[#allocation2 + $0x38] sm:$0xff] %vm409_vm8, %v2758_v37  ;;  %v365_v38 = vpop.f32.mrb[7].mxu0  ;;  %v537_v46 = vld [vmem:[#allocation2 + $0x8] sm:$0xff] }
  0xf7   : > { %415 = vst.msk [vmem:[#allocation2 + $0x28] sm:$0xff] %vm409_vm8, %v365_v38 }
  0xfa   : > { %v2771_v42 = vpop.f32.mrb[8].mxu1 }
  0xfb   : > { %v554_v44 = vadd.f32 %v2771_v42, %v538_v39  ;;  %v473_v45 = vpop.f32.mrb[9].mxu1  ;;  %v542_v4 = vld [vmem:[#allocation2 + $0x30] sm:$0xff] }
  0xfc   : > { %v552_v47 = vadd.f32 %v536_v14, %v473_v45  ;;  %v2772_v63 = vpop.f32.mrb[10].mxu1  ;;  %v2789_v48 = vpop.f32.mrb[8].mxu0  ;;  %v540_v55 = vld [vmem:[#allocation2 + $0x20] sm:$0xff]  ;;  %v550_v14 = vld [vmem:[#allocation2 + $0x70] sm:$0xff] }
  0xfd   : > { %570 = vst.msk [vmem:[#allocation2 + $0x10] sm:$0xff] %vm409_vm8, %v554_v44  ;;  %v555_v50 = vadd.f32 %v2772_v63, %v539_v43  ;;  %v476_v13 = vpop.f32.mrb[11].mxu1  ;;  %v631_v51 = vpop.f32.mrb[9].mxu0  ;;  %v543_v57 = vld [vmem:[#allocation2 + $0x38] sm:$0xff]  ;;  %v548_v44 = vld [vmem:[#allocation2 + $0x60] sm:$0xff] }
  0xfe   : > { %568 = vst.msk [vmem:[#allocation2] sm:$0xff] %vm409_vm8, %v552_v47  ;;  %v553_v52 = vadd.f32 %v537_v46, %v476_v13  ;;  %v2790_v53 = vpop.f32.mrb[10].mxu0  ;;  %v541_v61 = vld [vmem:[#allocation2 + $0x28] sm:$0xff]  ;;  %v551_v63 = vld [vmem:[#allocation2 + $0x78] sm:$0xff] }
  0xff   : > { %571 = vst.msk [vmem:[#allocation2 + $0x18] sm:$0xff] %vm409_vm8, %v555_v50  ;;  %v634_v54 = vpop.f32.mrb[11].mxu0 }
 0x100   : > { %569 = vst.msk [vmem:[#allocation2 + $0x8] sm:$0xff] %vm409_vm8, %v553_v52 }
 0x102   : > { %v2775_v56 = vpop.f32.mrb[12].mxu1 }
 0x103   : > { %v558_v59 = vadd.f32 %v2775_v56, %v542_v4  ;;  %v489_v60 = vpop.f32.mrb[13].mxu1 }
 0x104   : > { %v696_v58 = vld [vmem:[#allocation2 + $0x10] sm:$0xff]  ;;  %v556_v0 = vadd.f32 %v540_v55, %v489_v60  ;;  %v2776_v26 = vpop.f32.mrb[14].mxu1  ;;  %v2793_v41 = vpop.f32.mrb[12].mxu0 }
 0x105   : > { %v712_v2 = vadd.f32 %v2789_v48, %v696_v58  ;;  %574 = vst.msk [vmem:[#allocation2 + $0x30] sm:$0xff] %vm409_vm8, %v558_v59  ;;  %v694_v10 = vld [vmem:[#allocation2] sm:$0xff]  ;;  %v559_v3 = vadd.f32 %v2776_v26, %v543_v57  ;;  %v492_v5 = vpop.f32.mrb[15].mxu1  ;;  %v647_v62 = vpop.f32.mrb[13].mxu0 }
 0x106   : > { %v710_v6 = vadd.f32 %v694_v10, %v631_v51  ;;  %572 = vst.msk [vmem:[#allocation2 + $0x20] sm:$0xff] %vm409_vm8, %v556_v0  ;;  %v697_v1 = vld [vmem:[#allocation2 + $0x18] sm:$0xff]  ;;  %v557_v7 = vadd.f32 %v541_v61, %v492_v5  ;;  %v2794_v8 = vpop.f32.mrb[14].mxu0 }
 0x107   : > { %728 = vst.msk [vmem:[#allocation2 + $0x10] sm:$0xff] %vm409_vm8, %v712_v2  ;;  %v713_v12 = vadd.f32 %v2790_v53, %v697_v1  ;;  %575 = vst.msk [vmem:[#allocation2 + $0x38] sm:$0xff] %vm409_vm8, %v559_v3  ;;  %v695_v9 = vld [vmem:[#allocation2 + $0x8] sm:$0xff]  ;;  %v650_v11 = vpop.f32.mrb[15].mxu0 }
 0x108   : > { %726 = vst.msk [vmem:[#allocation2] sm:$0xff] %vm409_vm8, %v710_v6  ;;  %v711_v15 = vadd.f32 %v695_v9, %v634_v54  ;;  %573 = vst.msk [vmem:[#allocation2 + $0x28] sm:$0xff] %vm409_vm8, %v557_v7  ;;  %v549_v53 = vld [vmem:[#allocation2 + $0x68] sm:$0xff] }
 0x109   : > { %729 = vst.msk [vmem:[#allocation2 + $0x18] sm:$0xff] %vm409_vm8, %v713_v12 }
 0x10a   : > { %727 = vst.msk [vmem:[#allocation2 + $0x8] sm:$0xff] %vm409_vm8, %v711_v15  ;;  %v2779_v16 = vpop.f32.mrb[16].mxu1 }
 0x10b   : > { %v562_v17 = vadd.f32 %v2779_v16, %v546_v24  ;;  %v505_v28 = vpop.f32.mrb[17].mxu1 }
 0x10c   : > { %v700_v49 = vld [vmem:[#allocation2 + $0x30] sm:$0xff]  ;;  %v560_v19 = vadd.f32 %v544_v40, %v505_v28  ;;  %v2780_v20 = vpop.f32.mrb[18].mxu1  ;;  %v2797_v22 = vpop.f32.mrb[16].mxu0 }
 0x10d   : > { %v716_v23 = vadd.f32 %v2793_v41, %v700_v49  ;;  %578 = vst.msk [vmem:[#allocation2 + $0x50] sm:$0xff] %vm409_vm8, %v562_v17  ;;  %v698_v18 = vld [vmem:[#allocation2 + $0x20] sm:$0xff]  ;;  %v563_v25 = vadd.f32 %v2780_v20, %v547_v21  ;;  %v508_v27 = vpop.f32.mrb[19].mxu1  ;;  %v663_v30 = vpop.f32.mrb[17].mxu0 }
 0x10e   : > { %v714_v32 = vadd.f32 %v698_v18, %v647_v62  ;;  %576 = vst.msk [vmem:[#allocation2 + $0x40] sm:$0xff] %vm409_vm8, %v560_v19  ;;  %v701_v33 = vld [vmem:[#allocation2 + $0x38] sm:$0xff]  ;;  %v561_v34 = vadd.f32 %v545_v29, %v508_v27  ;;  %v2798_v35 = vpop.f32.mrb[18].mxu0  ;;  %v1119_v26 = vld [vmem:[#allocation2 + $0x10] sm:$0xff] }
 0x10f   : > { %732 = vst.msk [vmem:[#allocation2 + $0x30] sm:$0xff] %vm409_vm8, %v716_v23  ;;  %v717_v36 = vadd.f32 %v2794_v8, %v701_v33  ;;  %579 = vst.msk [vmem:[#allocation2 + $0x58] sm:$0xff] %vm409_vm8, %v563_v25  ;;  %v699_v31 = vld [vmem:[#allocation2 + $0x28] sm:$0xff]  ;;  %v666_v37 = vpop.f32.mrb[19].mxu0  ;;  %v1117_v10 = vld [vmem:[#allocation2] sm:$0xff] }
 0x110   : > { %730 = vst.msk [vmem:[#allocation2 + $0x20] sm:$0xff] %vm409_vm8, %v714_v32  ;;  %v715_v38 = vadd.f32 %v699_v31, %v650_v11  ;;  %577 = vst.msk [vmem:[#allocation2 + $0x48] sm:$0xff] %vm409_vm8, %v561_v34  ;;  %v1120_v6 = vld [vmem:[#allocation2 + $0x18] sm:$0xff] }
 0x111   : > { %733 = vst.msk [vmem:[#allocation2 + $0x38] sm:$0xff] %vm409_vm8, %v717_v36  ;;  %v1118_v11 = vld [vmem:[#allocation2 + $0x8] sm:$0xff] }
 0x112   : > { %731 = vst.msk [vmem:[#allocation2 + $0x28] sm:$0xff] %vm409_vm8, %v715_v38  ;;  %v2783_v39 = vpop.f32.mrb[20].mxu1 }
 0x113   : > { %v566_v42 = vadd.f32 %v2783_v39, %v550_v14  ;;  %v521_v43 = vpop.f32.mrb[21].mxu1 }
 0x114   : > { %v704_v45 = vld [vmem:[#allocation2 + $0x50] sm:$0xff]  ;;  %v564_v46 = vadd.f32 %v548_v44, %v521_v43  ;;  %v2784_v47 = vpop.f32.mrb[22].mxu1  ;;  %v2801_v48 = vpop.f32.mrb[20].mxu0 }
 0x115   : > { %v720_v50 = vadd.f32 %v2797_v22, %v704_v45  ;;  %582 = vst.msk [vmem:[#allocation2 + $0x70] sm:$0xff] %vm409_vm8, %v566_v42  ;;  %v702_v13 = vld [vmem:[#allocation2 + $0x40] sm:$0xff]  ;;  %v567_v51 = vadd.f32 %v2784_v47, %v551_v63  ;;  %v524_v52 = vpop.f32.mrb[23].mxu1  ;;  %v679_v54 = vpop.f32.mrb[21].mxu0 }
 0x116   : > { %v718_v4 = vadd.f32 %v702_v13, %v663_v30  ;;  %580 = vst.msk [vmem:[#allocation2 + $0x60] sm:$0xff] %vm409_vm8, %v564_v46  ;;  %v705_v55 = vld [vmem:[#allocation2 + $0x58] sm:$0xff]  ;;  %v565_v56 = vadd.f32 %v549_v53, %v524_v52  ;;  %v2802_v57 = vpop.f32.mrb[22].mxu0  ;;  %v1123_v22 = vld [vmem:[#allocation2 + $0x30] sm:$0xff] }
 0x117   : > { %736 = vst.msk [vmem:[#allocation2 + $0x50] sm:$0xff] %vm409_vm8, %v720_v50  ;;  %v721_v59 = vadd.f32 %v2798_v35, %v705_v55  ;;  %583 = vst.msk [vmem:[#allocation2 + $0x78] sm:$0xff] %vm409_vm8, %v567_v51  ;;  %v703_v60 = vld [vmem:[#allocation2 + $0x48] sm:$0xff]  ;;  %v682_v61 = vpop.f32.mrb[23].mxu0  ;;  %v1121_v25 = vld [vmem:[#allocation2 + $0x20] sm:$0xff] }
 0x118   : > { %734 = vst.msk [vmem:[#allocation2 + $0x40] sm:$0xff] %vm409_vm8, %v718_v4  ;;  %v719_v58 = vadd.f32 %v703_v60, %v666_v37  ;;  %581 = vst.msk [vmem:[#allocation2 + $0x68] sm:$0xff] %vm409_vm8, %v565_v56  ;;  %v1124_v32 = vld [vmem:[#allocation2 + $0x38] sm:$0xff] }
 0x119   : > { %737 = vst.msk [vmem:[#allocation2 + $0x58] sm:$0xff] %vm409_vm8, %v721_v59  ;;  %v1122_v37 = vld [vmem:[#allocation2 + $0x28] sm:$0xff] }
 0x11a   : > { %735 = vst.msk [vmem:[#allocation2 + $0x48] sm:$0xff] %vm409_vm8, %v719_v58  ;;  %v2807_v0 = vpop.f32.mrb[24].mxu1 }
 0x11b   : > { %v1135_v41 = vadd.f32 %v2807_v0, %v1119_v26  ;;  %v1054_v2 = vpop.f32.mrb[25].mxu1 }
 0x11c   : > { %v708_v3 = vld [vmem:[#allocation2 + $0x70] sm:$0xff]  ;;  %v1133_v5 = vadd.f32 %v1117_v10, %v1054_v2  ;;  %v2808_v62 = vpop.f32.mrb[26].mxu1  ;;  %v2825_v1 = vpop.f32.mrb[24].mxu0 }
 0x11d   : > { %v724_v7 = vadd.f32 %v2801_v48, %v708_v3  ;;  %v706_v8 = vld [vmem:[#allocation2 + $0x60] sm:$0xff]  ;;  %1151 = vst.msk [vmem:[#allocation2 + $0x10] sm:$0xff] %vm409_vm8, %v1135_v41  ;;  %v1136_v12 = vadd.f32 %v2808_v62, %v1120_v6  ;;  %v1057_v9 = vpop.f32.mrb[27].mxu1  ;;  %v1234_v15 = vpop.f32.mrb[25].mxu0 }
 0x11e   : > { %v722_v16 = vadd.f32 %v706_v8, %v679_v54  ;;  %v709_v24 = vld [vmem:[#allocation2 + $0x78] sm:$0xff]  ;;  %1149 = vst.msk [vmem:[#allocation2] sm:$0xff] %vm409_vm8, %v1133_v5  ;;  %v1134_v17 = vadd.f32 %v1118_v11, %v1057_v9  ;;  %v2826_v28 = vpop.f32.mrb[26].mxu0  ;;  %v1127_v48 = vld [vmem:[#allocation2 + $0x50] sm:$0xff] }
 0x11f   : > { %740 = vst.msk [vmem:[#allocation2 + $0x70] sm:$0xff] %vm409_vm8, %v724_v7  ;;  %v725_v40 = vadd.f32 %v2802_v57, %v709_v24  ;;  %v707_v49 = vld [vmem:[#allocation2 + $0x68] sm:$0xff]  ;;  %1152 = vst.msk [vmem:[#allocation2 + $0x18] sm:$0xff] %vm409_vm8, %v1136_v12  ;;  %v1237_v19 = vpop.f32.mrb[27].mxu0  ;;  %v1125_v51 = vld [vmem:[#allocation2 + $0x40] sm:$0xff] }
 0x120   : > { %738 = vst.msk [vmem:[#allocation2 + $0x60] sm:$0xff] %vm409_vm8, %v722_v16  ;;  %v723_v20 = vadd.f32 %v707_v49, %v682_v61  ;;  %1150 = vst.msk [vmem:[#allocation2 + $0x8] sm:$0xff] %vm409_vm8, %v1134_v17  ;;  %v1128_v4 = vld [vmem:[#allocation2 + $0x58] sm:$0xff] }
 0x121   : > { %741 = vst.msk [vmem:[#allocation2 + $0x78] sm:$0xff] %vm409_vm8, %v725_v40  ;;  %v1126_v61 = vld [vmem:[#allocation2 + $0x48] sm:$0xff] }
 0x122   : > { %739 = vst.msk [vmem:[#allocation2 + $0x68] sm:$0xff] %vm409_vm8, %v723_v20  ;;  %v2811_v21 = vpop.f32.mrb[28].mxu1 }
 0x123   : > { %v1139_v23 = vadd.f32 %v2811_v21, %v1123_v22  ;;  %v1070_v18 = vpop.f32.mrb[29].mxu1 }
 0x124   : > { %v1299_v27 = vld [vmem:[#allocation2 + $0x10] sm:$0xff]  ;;  %v1137_v29 = vadd.f32 %v1121_v25, %v1070_v18  ;;  %v2812_v30 = vpop.f32.mrb[30].mxu1  ;;  %v2829_v33 = vpop.f32.mrb[28].mxu0 }
 0x125   : > { %v1315_v34 = vadd.f32 %v2825_v1, %v1299_v27  ;;  %1155 = vst.msk [vmem:[#allocation2 + $0x30] sm:$0xff] %vm409_vm8, %v1139_v23  ;;  %v1297_v35 = vld [vmem:[#allocation2] sm:$0xff]  ;;  %v1140_v36 = vadd.f32 %v2812_v30, %v1124_v32  ;;  %v1073_v31 = vpop.f32.mrb[31].mxu1  ;;  %v1250_v38 = vpop.f32.mrb[29].mxu0 }
 0x126   : > { %v1313_v39 = vadd.f32 %v1297_v35, %v1234_v15  ;;  %1153 = vst.msk [vmem:[#allocation2 + $0x20] sm:$0xff] %vm409_vm8, %v1137_v29  ;;  %v1300_v14 = vld [vmem:[#allocation2 + $0x18] sm:$0xff]  ;;  %v1138_v42 = vadd.f32 %v1122_v37, %v1073_v31  ;;  %v2830_v43 = vpop.f32.mrb[30].mxu0  ;;  %v1131_v1 = vld [vmem:[#allocation2 + $0x70] sm:$0xff] }
 0x127   : > { %1331 = vst.msk [vmem:[#allocation2 + $0x10] sm:$0xff] %vm409_vm8, %v1315_v34  ;;  %v1316_v44 = vadd.f32 %v2826_v28, %v1300_v14  ;;  %1156 = vst.msk [vmem:[#allocation2 + $0x38] sm:$0xff] %vm409_vm8, %v1140_v36  ;;  %v1298_v45 = vld [vmem:[#allocation2 + $0x8] sm:$0xff]  ;;  %v1253_v46 = vpop.f32.mrb[31].mxu0  ;;  %v1129_v12 = vld [vmem:[#allocation2 + $0x60] sm:$0xff] }
 0x128   : > { %1329 = vst.msk [vmem:[#allocation2] sm:$0xff] %vm409_vm8, %v1313_v39  ;;  %v1314_v47 = vadd.f32 %v1298_v45, %v1237_v19  ;;  %1154 = vst.msk [vmem:[#allocation2 + $0x28] sm:$0xff] %vm409_vm8, %v1138_v42  ;;  %v1132_v16 = vld [vmem:[#allocation2 + $0x78] sm:$0xff] }
 0x129   : > { %1332 = vst.msk [vmem:[#allocation2 + $0x18] sm:$0xff] %vm409_vm8, %v1316_v44  ;;  %v1130_v19 = vld [vmem:[#allocation2 + $0x68] sm:$0xff] }
 0x12a   : > { %1330 = vst.msk [vmem:[#allocation2 + $0x8] sm:$0xff] %vm409_vm8, %v1314_v47  ;;  %v2815_v63 = vpop.f32.mrb[32].mxu1 }
 0x12b   : > { %v1143_v50 = vadd.f32 %v2815_v63, %v1127_v48  ;;  %v1086_v13 = vpop.f32.mrb[33].mxu1 }
 0x12c   : > { %v1303_v52 = vld [vmem:[#allocation2 + $0x30] sm:$0xff]  ;;  %v1141_v53 = vadd.f32 %v1125_v51, %v1086_v13  ;;  %v2816_v54 = vpop.f32.mrb[34].mxu1  ;;  %v2833_v55 = vpop.f32.mrb[32].mxu0 }
 0x12d   : > { %v1319_v56 = vadd.f32 %v2829_v33, %v1303_v52  ;;  %1159 = vst.msk [vmem:[#allocation2 + $0x50] sm:$0xff] %vm409_vm8, %v1143_v50  ;;  %v1301_v57 = vld [vmem:[#allocation2 + $0x20] sm:$0xff]  ;;  %v1144_v59 = vadd.f32 %v2816_v54, %v1128_v4  ;;  %v1089_v60 = vpop.f32.mrb[35].mxu1  ;;  %v1266_v58 = vpop.f32.mrb[33].mxu0 }
 0x12e   : > { %v1317_v0 = vadd.f32 %v1301_v57, %v1250_v38  ;;  %1157 = vst.msk [vmem:[#allocation2 + $0x40] sm:$0xff] %vm409_vm8, %v1141_v53  ;;  %v1304_v26 = vld [vmem:[#allocation2 + $0x38] sm:$0xff]  ;;  %v1142_v41 = vadd.f32 %v1126_v61, %v1089_v60  ;;  %v2834_v2 = vpop.f32.mrb[34].mxu0  ;;  %v1479_v33 = vld [vmem:[#allocation2 + $0x10] sm:$0xff] }
 0x12f   : > { %1335 = vst.msk [vmem:[#allocation2 + $0x30] sm:$0xff] %vm409_vm8, %v1319_v56  ;;  %v1320_v10 = vadd.f32 %v2830_v43, %v1304_v26  ;;  %1160 = vst.msk [vmem:[#allocation2 + $0x58] sm:$0xff] %vm409_vm8, %v1144_v59  ;;  %v1302_v3 = vld [vmem:[#allocation2 + $0x28] sm:$0xff]  ;;  %v1269_v5 = vpop.f32.mrb[35].mxu0  ;;  %v1477_v36 = vld [vmem:[#allocation2] sm:$0xff] }
 0x130   : > { %1333 = vst.msk [vmem:[#allocation2 + $0x20] sm:$0xff] %vm409_vm8, %v1317_v0  ;;  %v1318_v62 = vadd.f32 %v1302_v3, %v1253_v46  ;;  %1158 = vst.msk [vmem:[#allocation2 + $0x48] sm:$0xff] %vm409_vm8, %v1142_v41  ;;  %v1480_v39 = vld [vmem:[#allocation2 + $0x18] sm:$0xff] }
 0x131   : > { %1336 = vst.msk [vmem:[#allocation2 + $0x38] sm:$0xff] %vm409_vm8, %v1320_v10  ;;  %v1478_v46 = vld [vmem:[#allocation2 + $0x8] sm:$0xff] }
 0x132   : > { %1334 = vst.msk [vmem:[#allocation2 + $0x28] sm:$0xff] %vm409_vm8, %v1318_v62  ;;  %v2819_v6 = vpop.f32.mrb[36].mxu1 }
 0x133   : > { %v1147_v7 = vadd.f32 %v2819_v6, %v1131_v1  ;;  %v1102_v8 = vpop.f32.mrb[37].mxu1 }
 0x134   : > { %v1307_v9 = vld [vmem:[#allocation2 + $0x50] sm:$0xff]  ;;  %v1145_v11 = vadd.f32 %v1129_v12, %v1102_v8  ;;  %v2820_v15 = vpop.f32.mrb[38].mxu1  ;;  %v2837_v24 = vpop.f32.mrb[36].mxu0 }
 0x135   : > { %v1323_v17 = vadd.f32 %v2833_v55, %v1307_v9  ;;  %1163 = vst.msk [vmem:[#allocation2 + $0x70] sm:$0xff] %vm409_vm8, %v1147_v7  ;;  %v1305_v28 = vld [vmem:[#allocation2 + $0x40] sm:$0xff]  ;;  %v1148_v40 = vadd.f32 %v2820_v15, %v1132_v16  ;;  %v1105_v49 = vpop.f32.mrb[39].mxu1  ;;  %v1282_v20 = vpop.f32.mrb[37].mxu0 }
 0x136   : > { %v1321_v21 = vadd.f32 %v1305_v28, %v1266_v58  ;;  %1161 = vst.msk [vmem:[#allocation2 + $0x60] sm:$0xff] %vm409_vm8, %v1145_v11  ;;  %v1308_v22 = vld [vmem:[#allocation2 + $0x58] sm:$0xff]  ;;  %v1146_v23 = vadd.f32 %v1130_v19, %v1105_v49  ;;  %v2838_v18 = vpop.f32.mrb[38].mxu0  ;;  %v1483_v55 = vld [vmem:[#allocation2 + $0x30] sm:$0xff] }
 0x137   : > { %1339 = vst.msk [vmem:[#allocation2 + $0x50] sm:$0xff] %vm409_vm8, %v1323_v17  ;;  %v1324_v25 = vadd.f32 %v2834_v2, %v1308_v22  ;;  %1164 = vst.msk [vmem:[#allocation2 + $0x78] sm:$0xff] %vm409_vm8, %v1148_v40  ;;  %v1306_v27 = vld [vmem:[#allocation2 + $0x48] sm:$0xff]  ;;  %v1285_v29 = vpop.f32.mrb[39].mxu0  ;;  %v1481_v59 = vld [vmem:[#allocation2 + $0x20] sm:$0xff] }
 0x138   : > { %1337 = vst.msk [vmem:[#allocation2 + $0x40] sm:$0xff] %vm409_vm8, %v1321_v21  ;;  %v1322_v30 = vadd.f32 %v1306_v27, %v1269_v5  ;;  %1162 = vst.msk [vmem:[#allocation2 + $0x68] sm:$0xff] %vm409_vm8, %v1146_v23  ;;  %v1484_v0 = vld [vmem:[#allocation2 + $0x38] sm:$0xff] }
 0x139   : > { %1340 = vst.msk [vmem:[#allocation2 + $0x58] sm:$0xff] %vm409_vm8, %v1324_v25  ;;  %v1482_v5 = vld [vmem:[#allocation2 + $0x28] sm:$0xff] }
 0x13a   : > { %1338 = vst.msk [vmem:[#allocation2 + $0x48] sm:$0xff] %vm409_vm8, %v1322_v30  ;;  %v2843_v32 = vpop.f32.mrb[40].mxu1 }
 0x13b   : > { %v1495_v34 = vadd.f32 %v2843_v32, %v1479_v33  ;;  %v1414_v35 = vpop.f32.mrb[41].mxu1 }
 0x13c   : > { %v1311_v31 = vld [vmem:[#allocation2 + $0x70] sm:$0xff]  ;;  %v1493_v37 = vadd.f32 %v1477_v36, %v1414_v35  ;;  %v2844_v38 = vpop.f32.mrb[42].mxu1  ;;  %v2861_v14 = vpop.f32.mrb[40].mxu0 }
 0x13d   : > { %v1327_v42 = vadd.f32 %v2837_v24, %v1311_v31  ;;  %v1309_v43 = vld [vmem:[#allocation2 + $0x60] sm:$0xff]  ;;  %1511 = vst.msk [vmem:[#allocation2 + $0x10] sm:$0xff] %vm409_vm8, %v1495_v34  ;;  %v1496_v44 = vadd.f32 %v2844_v38, %v1480_v39  ;;  %v1417_v45 = vpop.f32.mrb[43].mxu1  ;;  %v1725_v47 = vpop.f32.mrb[41].mxu0 }
 0x13e   : > { %v1325_v63 = vadd.f32 %v1309_v43, %v1282_v20  ;;  %v1312_v48 = vld [vmem:[#allocation2 + $0x78] sm:$0xff]  ;;  %1509 = vst.msk [vmem:[#allocation2] sm:$0xff] %vm409_vm8, %v1493_v37  ;;  %v1494_v50 = vadd.f32 %v1478_v46, %v1417_v45  ;;  %v2862_v13 = vpop.f32.mrb[42].mxu0  ;;  %v1487_v24 = vld [vmem:[#allocation2 + $0x50] sm:$0xff] }
 0x13f   : > { %1343 = vst.msk [vmem:[#allocation2 + $0x70] sm:$0xff] %vm409_vm8, %v1327_v42  ;;  %v1328_v51 = vadd.f32 %v2838_v18, %v1312_v48  ;;  %v1310_v52 = vld [vmem:[#allocation2 + $0x68] sm:$0xff]  ;;  %1512 = vst.msk [vmem:[#allocation2 + $0x18] sm:$0xff] %vm409_vm8, %v1496_v44  ;;  %v1728_v53 = vpop.f32.mrb[43].mxu0  ;;  %v1485_v40 = vld [vmem:[#allocation2 + $0x40] sm:$0xff] }
 0x140   : > { %1341 = vst.msk [vmem:[#allocation2 + $0x60] sm:$0xff] %vm409_vm8, %v1325_v63  ;;  %v1326_v54 = vadd.f32 %v1310_v52, %v1285_v29  ;;  %1510 = vst.msk [vmem:[#allocation2 + $0x8] sm:$0xff] %vm409_vm8, %v1494_v50  ;;  %v1488_v21 = vld [vmem:[#allocation2 + $0x58] sm:$0xff] }
 0x141   : > { %1344 = vst.msk [vmem:[#allocation2 + $0x78] sm:$0xff] %vm409_vm8, %v1328_v51  ;;  %v1486_v29 = vld [vmem:[#allocation2 + $0x48] sm:$0xff] }
 0x142   : > { %1342 = vst.msk [vmem:[#allocation2 + $0x68] sm:$0xff] %vm409_vm8, %v1326_v54  ;;  %v2847_v4 = vpop.f32.mrb[44].mxu1 }
 0x143   : > { %v1499_v56 = vadd.f32 %v2847_v4, %v1483_v55  ;;  %v1430_v57 = vpop.f32.mrb[45].mxu1 }
 0x144   : > { %v1790_v60 = vld [vmem:[#allocation2 + $0x10] sm:$0xff]  ;;  %v1497_v61 = vadd.f32 %v1481_v59, %v1430_v57  ;;  %v2848_v58 = vpop.f32.mrb[46].mxu1  ;;  %v2865_v26 = vpop.f32.mrb[44].mxu0 }
 0x145   : > { %v1806_v41 = vadd.f32 %v2861_v14, %v1790_v60  ;;  %1515 = vst.msk [vmem:[#allocation2 + $0x30] sm:$0xff] %vm409_vm8, %v1499_v56  ;;  %v1788_v2 = vld [vmem:[#allocation2] sm:$0xff]  ;;  %v1500_v10 = vadd.f32 %v2848_v58, %v1484_v0  ;;  %v1433_v3 = vpop.f32.mrb[47].mxu1  ;;  %v1741_v62 = vpop.f32.mrb[45].mxu0 }
 0x146   : > { %v1804_v6 = vadd.f32 %v1788_v2, %v1725_v47  ;;  %1513 = vst.msk [vmem:[#allocation2 + $0x20] sm:$0xff] %vm409_vm8, %v1497_v61  ;;  %v1791_v1 = vld [vmem:[#allocation2 + $0x18] sm:$0xff]  ;;  %v1498_v7 = vadd.f32 %v1482_v5, %v1433_v3  ;;  %v2866_v8 = vpop.f32.mrb[46].mxu0  ;;  %v1491_v14 = vld [vmem:[#allocation2 + $0x70] sm:$0xff] }
 0x147   : > { %1822 = vst.msk [vmem:[#allocation2 + $0x10] sm:$0xff] %vm409_vm8, %v1806_v41  ;;  %v1807_v12 = vadd.f32 %v2862_v13, %v1791_v1  ;;  %1516 = vst.msk [vmem:[#allocation2 + $0x38] sm:$0xff] %vm409_vm8, %v1500_v10  ;;  %v1789_v9 = vld [vmem:[#allocation2 + $0x8] sm:$0xff]  ;;  %v1744_v11 = vpop.f32.mrb[47].mxu0  ;;  %v1489_v44 = vld [vmem:[#allocation2 + $0x60] sm:$0xff] }
 0x148   : > { %1820 = vst.msk [vmem:[#allocation2] sm:$0xff] %vm409_vm8, %v1804_v6  ;;  %v1805_v15 = vadd.f32 %v1789_v9, %v1728_v53  ;;  %1514 = vst.msk [vmem:[#allocation2 + $0x28] sm:$0xff] %vm409_vm8, %v1498_v7  ;;  %v1492_v63 = vld [vmem:[#allocation2 + $0x78] sm:$0xff] }
 0x149   : > { %1823 = vst.msk [vmem:[#allocation2 + $0x18] sm:$0xff] %vm409_vm8, %v1807_v12  ;;  %v1490_v53 = vld [vmem:[#allocation2 + $0x68] sm:$0xff] }
 0x14a   : > { %1821 = vst.msk [vmem:[#allocation2 + $0x8] sm:$0xff] %vm409_vm8, %v1805_v15  ;;  %v2851_v16 = vpop.f32.mrb[48].mxu1 }
 0x14b   : > { %v1503_v17 = vadd.f32 %v2851_v16, %v1487_v24  ;;  %v1446_v28 = vpop.f32.mrb[49].mxu1 }
 0x14c   : > { %v1794_v49 = vld [vmem:[#allocation2 + $0x30] sm:$0xff]  ;;  %v1501_v19 = vadd.f32 %v1485_v40, %v1446_v28  ;;  %v2852_v20 = vpop.f32.mrb[50].mxu1  ;;  %v2869_v22 = vpop.f32.mrb[48].mxu0 }
 0x14d   : > { %v1810_v23 = vadd.f32 %v2865_v26, %v1794_v49  ;;  %1519 = vst.msk [vmem:[#allocation2 + $0x50] sm:$0xff] %vm409_vm8, %v1503_v17  ;;  %v1792_v18 = vld [vmem:[#allocation2 + $0x20] sm:$0xff]  ;;  %v1504_v25 = vadd.f32 %v2852_v20, %v1488_v21  ;;  %v1449_v27 = vpop.f32.mrb[51].mxu1  ;;  %v1757_v30 = vpop.f32.mrb[49].mxu0 }
 0x14e   : > { %v1808_v32 = vadd.f32 %v1792_v18, %v1741_v62  ;;  %1517 = vst.msk [vmem:[#allocation2 + $0x40] sm:$0xff] %vm409_vm8, %v1501_v19  ;;  %v1795_v33 = vld [vmem:[#allocation2 + $0x38] sm:$0xff]  ;;  %v1502_v34 = vadd.f32 %v1486_v29, %v1449_v27  ;;  %v2870_v35 = vpop.f32.mrb[50].mxu0  ;;  %v1956_v26 = vld [vmem:[#allocation2 + $0x10] sm:$0xff] }
 0x14f   : > { %1826 = vst.msk [vmem:[#allocation2 + $0x30] sm:$0xff] %vm409_vm8, %v1810_v23  ;;  %v1811_v36 = vadd.f32 %v2866_v8, %v1795_v33  ;;  %1520 = vst.msk [vmem:[#allocation2 + $0x58] sm:$0xff] %vm409_vm8, %v1504_v25  ;;  %v1793_v31 = vld [vmem:[#allocation2 + $0x28] sm:$0xff]  ;;  %v1760_v37 = vpop.f32.mrb[51].mxu0  ;;  %v1954_v10 = vld [vmem:[#allocation2] sm:$0xff] }
 0x150   : > { %1824 = vst.msk [vmem:[#allocation2 + $0x20] sm:$0xff] %vm409_vm8, %v1808_v32  ;;  %v1809_v38 = vadd.f32 %v1793_v31, %v1744_v11  ;;  %1518 = vst.msk [vmem:[#allocation2 + $0x48] sm:$0xff] %vm409_vm8, %v1502_v34  ;;  %v1957_v6 = vld [vmem:[#allocation2 + $0x18] sm:$0xff] }
 0x151   : > { %1827 = vst.msk [vmem:[#allocation2 + $0x38] sm:$0xff] %vm409_vm8, %v1811_v36  ;;  %v1955_v11 = vld [vmem:[#allocation2 + $0x8] sm:$0xff] }
 0x152   : > { %1825 = vst.msk [vmem:[#allocation2 + $0x28] sm:$0xff] %vm409_vm8, %v1809_v38  ;;  %v2855_v39 = vpop.f32.mrb[52].mxu1 }
 0x153   : > { %v1507_v42 = vadd.f32 %v2855_v39, %v1491_v14  ;;  %v1462_v43 = vpop.f32.mrb[53].mxu1 }
 0x154   : > { %v1798_v45 = vld [vmem:[#allocation2 + $0x50] sm:$0xff]  ;;  %v1505_v46 = vadd.f32 %v1489_v44, %v1462_v43  ;;  %v2856_v47 = vpop.f32.mrb[54].mxu1  ;;  %v2873_v48 = vpop.f32.mrb[52].mxu0 }
 0x155   : > { %v1814_v50 = vadd.f32 %v2869_v22, %v1798_v45  ;;  %1523 = vst.msk [vmem:[#allocation2 + $0x70] sm:$0xff] %vm409_vm8, %v1507_v42  ;;  %v1796_v13 = vld [vmem:[#allocation2 + $0x40] sm:$0xff]  ;;  %v1508_v51 = vadd.f32 %v2856_v47, %v1492_v63  ;;  %v1465_v52 = vpop.f32.mrb[55].mxu1  ;;  %v1773_v54 = vpop.f32.mrb[53].mxu0 }
 0x156   : > { %v1812_v4 = vadd.f32 %v1796_v13, %v1757_v30  ;;  %1521 = vst.msk [vmem:[#allocation2 + $0x60] sm:$0xff] %vm409_vm8, %v1505_v46  ;;  %v1799_v55 = vld [vmem:[#allocation2 + $0x58] sm:$0xff]  ;;  %v1506_v56 = vadd.f32 %v1490_v53, %v1465_v52  ;;  %v2874_v57 = vpop.f32.mrb[54].mxu0  ;;  %v1960_v22 = vld [vmem:[#allocation2 + $0x30] sm:$0xff] }
 0x157   : > { %1830 = vst.msk [vmem:[#allocation2 + $0x50] sm:$0xff] %vm409_vm8, %v1814_v50  ;;  %v1815_v59 = vadd.f32 %v2870_v35, %v1799_v55  ;;  %1524 = vst.msk [vmem:[#allocation2 + $0x78] sm:$0xff] %vm409_vm8, %v1508_v51  ;;  %v1797_v60 = vld [vmem:[#allocation2 + $0x48] sm:$0xff]  ;;  %v1776_v61 = vpop.f32.mrb[55].mxu0  ;;  %v1958_v25 = vld [vmem:[#allocation2 + $0x20] sm:$0xff] }
 0x158   : > { %1828 = vst.msk [vmem:[#allocation2 + $0x40] sm:$0xff] %vm409_vm8, %v1812_v4  ;;  %v1813_v58 = vadd.f32 %v1797_v60, %v1760_v37  ;;  %1522 = vst.msk [vmem:[#allocation2 + $0x68] sm:$0xff] %vm409_vm8, %v1506_v56  ;;  %v1961_v32 = vld [vmem:[#allocation2 + $0x38] sm:$0xff] }
 0x159   : > { %1831 = vst.msk [vmem:[#allocation2 + $0x58] sm:$0xff] %vm409_vm8, %v1815_v59  ;;  %v1959_v37 = vld [vmem:[#allocation2 + $0x28] sm:$0xff] }
 0x15a   : > { %1829 = vst.msk [vmem:[#allocation2 + $0x48] sm:$0xff] %vm409_vm8, %v1813_v58  ;;  %v2879_v0 = vpop.f32.mrb[56].mxu1 }
 0x15b   : > { %v1972_v41 = vadd.f32 %v2879_v0, %v1956_v26  ;;  %v1891_v2 = vpop.f32.mrb[57].mxu1 }
 0x15c   : > { %v1802_v3 = vld [vmem:[#allocation2 + $0x70] sm:$0xff]  ;;  %v1970_v5 = vadd.f32 %v1954_v10, %v1891_v2  ;;  %v2880_v62 = vpop.f32.mrb[58].mxu1  ;;  %v2897_v1 = vpop.f32.mrb[56].mxu0 }
 0x15d   : > { %v1818_v7 = vadd.f32 %v2873_v48, %v1802_v3  ;;  %v1800_v8 = vld [vmem:[#allocation2 + $0x60] sm:$0xff]  ;;  %1988 = vst.msk [vmem:[#allocation2 + $0x10] sm:$0xff] %vm409_vm8, %v1972_v41  ;;  %v1973_v12 = vadd.f32 %v2880_v62, %v1957_v6  ;;  %v1894_v9 = vpop.f32.mrb[59].mxu1  ;;  %v2057_v15 = vpop.f32.mrb[57].mxu0 }
 0x15e   : > { %v1816_v16 = vadd.f32 %v1800_v8, %v1773_v54  ;;  %v1803_v24 = vld [vmem:[#allocation2 + $0x78] sm:$0xff]  ;;  %1986 = vst.msk [vmem:[#allocation2] sm:$0xff] %vm409_vm8, %v1970_v5  ;;  %v1971_v17 = vadd.f32 %v1955_v11, %v1894_v9  ;;  %v2898_v28 = vpop.f32.mrb[58].mxu0  ;;  %v1964_v48 = vld [vmem:[#allocation2 + $0x50] sm:$0xff] }
 0x15f   : > { %1834 = vst.msk [vmem:[#allocation2 + $0x70] sm:$0xff] %vm409_vm8, %v1818_v7  ;;  %v1819_v40 = vadd.f32 %v2874_v57, %v1803_v24  ;;  %v1801_v49 = vld [vmem:[#allocation2 + $0x68] sm:$0xff]  ;;  %1989 = vst.msk [vmem:[#allocation2 + $0x18] sm:$0xff] %vm409_vm8, %v1973_v12  ;;  %v2060_v19 = vpop.f32.mrb[59].mxu0  ;;  %v1962_v51 = vld [vmem:[#allocation2 + $0x40] sm:$0xff] }
 0x160   : > { %1832 = vst.msk [vmem:[#allocation2 + $0x60] sm:$0xff] %vm409_vm8, %v1816_v16  ;;  %v1817_v20 = vadd.f32 %v1801_v49, %v1776_v61  ;;  %1987 = vst.msk [vmem:[#allocation2 + $0x8] sm:$0xff] %vm409_vm8, %v1971_v17  ;;  %v1965_v4 = vld [vmem:[#allocation2 + $0x58] sm:$0xff] }
 0x161   : > { %1835 = vst.msk [vmem:[#allocation2 + $0x78] sm:$0xff] %vm409_vm8, %v1819_v40  ;;  %v1963_v61 = vld [vmem:[#allocation2 + $0x48] sm:$0xff] }
 0x162   : > { %1833 = vst.msk [vmem:[#allocation2 + $0x68] sm:$0xff] %vm409_vm8, %v1817_v20  ;;  %v2883_v21 = vpop.f32.mrb[60].mxu1 }
 0x163   : > { %v1976_v23 = vadd.f32 %v2883_v21, %v1960_v22  ;;  %v1907_v18 = vpop.f32.mrb[61].mxu1 }
 0x164   : > { %v2122_v27 = vld [vmem:[#allocation2 + $0x10] sm:$0xff]  ;;  %v1974_v29 = vadd.f32 %v1958_v25, %v1907_v18  ;;  %v2884_v30 = vpop.f32.mrb[62].mxu1  ;;  %v2901_v33 = vpop.f32.mrb[60].mxu0 }
 0x165   : > { %v2138_v34 = vadd.f32 %v2897_v1, %v2122_v27  ;;  %1992 = vst.msk [vmem:[#allocation2 + $0x30] sm:$0xff] %vm409_vm8, %v1976_v23  ;;  %v2120_v35 = vld [vmem:[#allocation2] sm:$0xff]  ;;  %v1977_v36 = vadd.f32 %v2884_v30, %v1961_v32  ;;  %v1910_v31 = vpop.f32.mrb[63].mxu1  ;;  %v2073_v38 = vpop.f32.mrb[61].mxu0 }
 0x166   : > { %v2136_v39 = vadd.f32 %v2120_v35, %v2057_v15  ;;  %1990 = vst.msk [vmem:[#allocation2 + $0x20] sm:$0xff] %vm409_vm8, %v1974_v29  ;;  %v2123_v14 = vld [vmem:[#allocation2 + $0x18] sm:$0xff]  ;;  %v1975_v42 = vadd.f32 %v1959_v37, %v1910_v31  ;;  %v2902_v43 = vpop.f32.mrb[62].mxu0 }
 0x167   : > { %2154 = vst.msk [vmem:[#allocation2 + $0x10] sm:$0xff] %vm409_vm8, %v2138_v34  ;;  %v2139_v44 = vadd.f32 %v2898_v28, %v2123_v14  ;;  %1993 = vst.msk [vmem:[#allocation2 + $0x38] sm:$0xff] %vm409_vm8, %v1977_v36  ;;  %v2121_v45 = vld [vmem:[#allocation2 + $0x8] sm:$0xff]  ;;  %v2076_v46 = vpop.f32.mrb[63].mxu0  ;;  %v1966_v18 = vld [vmem:[#allocation2 + $0x60] sm:$0xff] }
 0x168   : > { %2152 = vst.msk [vmem:[#allocation2] sm:$0xff] %vm409_vm8, %v2136_v39  ;;  %v2137_v47 = vadd.f32 %v2121_v45, %v2060_v19  ;;  %1991 = vst.msk [vmem:[#allocation2 + $0x28] sm:$0xff] %vm409_vm8, %v1975_v42  ;;  %v1968_v19 = vld [vmem:[#allocation2 + $0x70] sm:$0xff]  ;;  %v1969_v25 = vld [vmem:[#allocation2 + $0x78] sm:$0xff] }
 0x169   : > { %2155 = vst.msk [vmem:[#allocation2 + $0x18] sm:$0xff] %vm409_vm8, %v2139_v44  ;;  %v1967_v42 = vld [vmem:[#allocation2 + $0x68] sm:$0xff] }
 0x16a   : > { %2153 = vst.msk [vmem:[#allocation2 + $0x8] sm:$0xff] %vm409_vm8, %v2137_v47  ;;  %v2887_v63 = vpop.f32.mrb[64].mxu1 }
 0x16b   : > { %v1980_v50 = vadd.f32 %v2887_v63, %v1964_v48  ;;  %v1923_v13 = vpop.f32.mrb[65].mxu1 }
 0x16c   : > { %v2126_v52 = vld [vmem:[#allocation2 + $0x30] sm:$0xff]  ;;  %v1978_v53 = vadd.f32 %v1962_v51, %v1923_v13  ;;  %v2888_v54 = vpop.f32.mrb[66].mxu1  ;;  %v2905_v55 = vpop.f32.mrb[64].mxu0 }
 0x16d   : > { %v2142_v56 = vadd.f32 %v2901_v33, %v2126_v52  ;;  %1996 = vst.msk [vmem:[#allocation2 + $0x50] sm:$0xff] %vm409_vm8, %v1980_v50  ;;  %v2124_v57 = vld [vmem:[#allocation2 + $0x20] sm:$0xff]  ;;  %v1981_v59 = vadd.f32 %v2888_v54, %v1965_v4  ;;  %v1926_v60 = vpop.f32.mrb[67].mxu1  ;;  %v2089_v58 = vpop.f32.mrb[65].mxu0 }
 0x16e   : > { %v2170_v0 = vld [vmem:[#allocation2 + $0x10] sm:$0xff]  ;;  %v2140_v26 = vadd.f32 %v2124_v57, %v2073_v38  ;;  %1994 = vst.msk [vmem:[#allocation2 + $0x40] sm:$0xff] %vm409_vm8, %v1978_v53  ;;  %v2127_v41 = vld [vmem:[#allocation2 + $0x38] sm:$0xff]  ;;  %v1979_v2 = vadd.f32 %v1963_v61, %v1926_v60  ;;  %v3605_v10 = vpop.f32.mrb[66].mxu0 }
 0x16f   : > { %v2654_v3 = vpack.c.bf16 %v2170_v0, %v2170_v0  ;;  %v2168_v5 = vld [vmem:[#allocation2] sm:$0xff]  ;;  %2158 = vst.msk [vmem:[#allocation2 + $0x30] sm:$0xff] %vm409_vm8, %v2142_v56  ;;  %v2143_v62 = vadd.f32 %v2902_v43, %v2127_v41  ;;  %1997 = vst.msk [vmem:[#allocation2 + $0x58] sm:$0xff] %vm409_vm8, %v1981_v59  ;;  %v2125_v6 = vld [vmem:[#allocation2 + $0x28] sm:$0xff]  ;;  %v3609_v1 = vpop.f32.mrb[67].mxu0  ;;  %v2304_v11 = vmul.f32 %v2170_v0, %v2170_v0  ;;  %v2268_v27 = vsel %vm409_vm8, %v2170_v0, 0.0 }
 0x170   : > { %v2652_v7 = vpack.c.bf16 %v2168_v5, %v2168_v5  ;;  %v2302_v8 = vmul.f32 %v2168_v5, %v2168_v5  ;;  %v2171_v12 = vld [vmem:[#allocation2 + $0x18] sm:$0xff]  ;;  %2156 = vst.msk [vmem:[#allocation2 + $0x20] sm:$0xff] %vm409_vm8, %v2140_v26  ;;  %v2141_v9 = vadd.f32 %v2125_v6, %v2076_v46  ;;  %1995 = vst.msk [vmem:[#allocation2 + $0x48] sm:$0xff] %vm409_vm8, %v1979_v2  ;;  %v2265_v24 = vsel %vm409_vm8, %v2168_v5, 0.0 }
 0x171   : > { %2251 = vst.msk [vmem:[%s3602_s4 + $0x8] sm:$0xf] %vm2248_vm9, %v2654_v3  ;;  %v2655_v15 = vpack.c.bf16 %v2171_v12, %v2171_v12  ;;  %v2169_v16 = vld [vmem:[#allocation2 + $0x8] sm:$0xff]  ;;  %v2305_v20 = vmul.f32 %v2171_v12, %v2171_v12  ;;  %v2321_v44 = vsel %vm409_vm8, %v2304_v11, 0.0  ;;  %v2270_v48 = vsel %vm409_vm8, %v2171_v12, 0.0 }
 0x172   : > { %2159 = vst.msk [vmem:[#allocation2 + $0x38] sm:$0xff] %vm409_vm8, %v2143_v62  ;;  %v2653_v17 = vpack.c.bf16 %v2169_v16, %v2169_v16  ;;  %v2266_v28 = vsel %vm409_vm8, %v2169_v16, 0.0  ;;  %v2303_v40 = vmul.f32 %v2169_v16, %v2169_v16  ;;  %2157 = vst.msk [vmem:[#allocation2 + $0x28] sm:$0xff] %vm409_vm8, %v2141_v9  ;;  %v2891_v49 = vpop.f32.mrb[68].mxu1  ;;  %v2318_v29 = vsel %vm409_vm8, %v2302_v8, 0.0 }
 0x173   : > { %2249 = vst.msk [vmem:[%s3602_s4] sm:$0xf] %vm2248_vm9, %v2652_v7  ;;  %2252 = vst.msk [vmem:[%s3602_s4 + $0xc] sm:$0xf] %vm2248_vm9, %v2655_v15  ;;  %v2267_v21 = vadd.f32 %v2266_v28, %v2265_v24  ;;  %v1984_v22 = vadd.f32 %v2891_v49, %v1968_v19  ;;  %v1939_v23 = vpop.f32.mrb[69].mxu1  ;;  %v2323_v50 = vsel %vm409_vm8, %v2305_v20, 0.0 }
 0x174   : > { %2250 = vst.msk [vmem:[%s3602_s4 + $0x4] sm:$0xf] %vm2248_vm9, %v2653_v17  ;;  %v2319_v30 = vsel %vm409_vm8, %v2303_v40, 0.0  ;;  %v2130_v32 = vld [vmem:[#allocation2 + $0x50] sm:$0xff]  ;;  %v1982_v33 = vadd.f32 %v1966_v18, %v1939_v23  ;;  %v2892_v34 = vpop.f32.mrb[70].mxu1  ;;  %v2909_v35 = vpop.f32.mrb[68].mxu0 }
 0x175   : > { %v2269_v36 = vadd.f32 %v2268_v27, %v2267_v21  ;;  %v2320_v31 = vadd.f32 %v2319_v30, %v2318_v29  ;;  %v2146_v37 = vadd.f32 %v2905_v55, %v2130_v32  ;;  %2000 = vst.msk [vmem:[#allocation2 + $0x70] sm:$0xff] %vm409_vm8, %v1984_v22  ;;  %v2128_v38 = vld [vmem:[#allocation2 + $0x40] sm:$0xff]  ;;  %v1985_v39 = vadd.f32 %v2892_v34, %v1969_v25  ;;  %v1942_v14 = vpop.f32.mrb[71].mxu1  ;;  %v2105_v43 = vpop.f32.mrb[69].mxu0 }
 0x176   : > { %v2174_v45 = vld [vmem:[#allocation2 + $0x30] sm:$0xff]  ;;  %v2144_v46 = vadd.f32 %v2128_v38, %v2089_v58  ;;  %1998 = vst.msk [vmem:[#allocation2 + $0x60] sm:$0xff] %vm409_vm8, %v1982_v33  ;;  %v1983_v47 = vadd.f32 %v1967_v42, %v1942_v14  ;;  %v2910_v63 = vpop.f32.mrb[70].mxu0  ;;  %v2131_v59 = vld [vmem:[#allocation2 + $0x58] sm:$0xff] }
 0x177   : > { %v2322_v13 = vadd.f32 %v2321_v44, %v2320_v31  ;;  %v2658_v51 = vpack.c.bf16 %v2174_v45, %v2174_v45  ;;  %v2172_v52 = vld [vmem:[#allocation2 + $0x20] sm:$0xff]  ;;  %2162 = vst.msk [vmem:[#allocation2 + $0x50] sm:$0xff] %vm409_vm8, %v2146_v37  ;;  %2001 = vst.msk [vmem:[#allocation2 + $0x78] sm:$0xff] %vm409_vm8, %v1985_v39  ;;  %v2108_v53 = vpop.f32.mrb[71].mxu0  ;;  %v2271_v4 = vadd.f32 %v2270_v48, %v2269_v36  ;;  %v2129_v0 = vld [vmem:[#allocation2 + $0x48] sm:$0xff]  ;;  %v2276_v11 = vsel %vm409_vm8, %v2174_v45, 0.0 }
 0x178   : > { %v2656_v54 = vpack.c.bf16 %v2172_v52, %v2172_v52  ;;  %v2272_v55 = vsel %vm409_vm8, %v2172_v52, 0.0  ;;  %v2306_v56 = vmul.f32 %v2172_v52, %v2172_v52  ;;  %2160 = vst.msk [vmem:[#allocation2 + $0x40] sm:$0xff] %vm409_vm8, %v2144_v46  ;;  %1999 = vst.msk [vmem:[#allocation2 + $0x68] sm:$0xff] %vm409_vm8, %v1983_v47  ;;  %v2308_v26 = vmul.f32 %v2174_v45, %v2174_v45 }
 0x179   : > { %v2175_v57 = vld [vmem:[#allocation2 + $0x38] sm:$0xff]  ;;  %2255 = vst.msk [vmem:[%s3602_s4 + $0x18] sm:$0xf] %vm2248_vm9, %v2658_v51  ;;  %v2324_v60 = vadd.f32 %v2323_v50, %v2322_v13  ;;  %v2173_v58 = vld [vmem:[#allocation2 + $0x28] sm:$0xff]  ;;  %v2273_v41 = vadd.f32 %v2272_v55, %v2271_v4  ;;  %v2147_v7 = vadd.f32 %v3605_v10, %v2131_v59  ;;  %v2145_v12 = vadd.f32 %v2129_v0, %v3609_v1 }
 0x17a   : > { %v2659_v61 = vpack.c.bf16 %v2175_v57, %v2175_v57  ;;  %2253 = vst.msk [vmem:[%s3602_s4 + $0x10] sm:$0xf] %vm2248_vm9, %v2656_v54  ;;  %v2325_v2 = vsel %vm409_vm8, %v2306_v56, 0.0  ;;  %v2657_v3 = vpack.c.bf16 %v2173_v58, %v2173_v58  ;;  %v2274_v62 = vsel %vm409_vm8, %v2173_v58, 0.0 }
 0x17b   : > { %v2326_v5 = vadd.f32 %v2325_v2, %v2324_v60  ;;  %v2307_v6 = vmul.f32 %v2173_v58, %v2173_v58  ;;  %v2275_v8 = vadd.f32 %v2274_v62, %v2273_v41  ;;  %v2309_v15 = vmul.f32 %v2175_v57, %v2175_v57  ;;  %2163 = vst.msk [vmem:[#allocation2 + $0x58] sm:$0xff] %vm409_vm8, %v2147_v7 }
 0x17c   : > { %2256 = vst.msk [vmem:[%s3602_s4 + $0x1c] sm:$0xf] %vm2248_vm9, %v2659_v61  ;;  %2254 = vst.msk [vmem:[%s3602_s4 + $0x14] sm:$0xf] %vm2248_vm9, %v2657_v3  ;;  %v2134_v9 = vld [vmem:[#allocation2 + $0x70] sm:$0xff]  ;;  %v2329_v1 = vsel %vm409_vm8, %v2308_v26, 0.0 }
 0x17d   : > { %v2327_v16 = vsel %vm409_vm8, %v2307_v6, 0.0  ;;  %v2150_v24 = vadd.f32 %v2909_v35, %v2134_v9  ;;  %v2132_v17 = vld [vmem:[#allocation2 + $0x60] sm:$0xff]  ;;  %v2277_v28 = vadd.f32 %v2276_v11, %v2275_v8  ;;  %2161 = vst.msk [vmem:[#allocation2 + $0x48] sm:$0xff] %vm409_vm8, %v2145_v12  ;;  %v2278_v20 = vsel %vm409_vm8, %v2175_v57, 0.0 }
 0x17e   : > { %v2328_v40 = vadd.f32 %v2327_v16, %v2326_v5  ;;  %v2178_v49 = vld [vmem:[#allocation2 + $0x50] sm:$0xff]  ;;  %v2148_v10 = vadd.f32 %v2132_v17, %v2105_v43  ;;  %v2135_v19 = vld [vmem:[#allocation2 + $0x78] sm:$0xff]  ;;  %v2331_v32 = vsel %vm409_vm8, %v2309_v15, 0.0 }
 0x17f   : > { %v2662_v21 = vpack.c.bf16 %v2178_v49, %v2178_v49  ;;  %v2176_v22 = vld [vmem:[#allocation2 + $0x40] sm:$0xff]  ;;  %2166 = vst.msk [vmem:[#allocation2 + $0x70] sm:$0xff] %vm409_vm8, %v2150_v24  ;;  %v2151_v23 = vadd.f32 %v2910_v63, %v2135_v19  ;;  %v2133_v18 = vld [vmem:[#allocation2 + $0x68] sm:$0xff]  ;;  %v2279_v29 = vadd.f32 %v2278_v20, %v2277_v28  ;;  %v2312_v42 = vmul.f32 %v2178_v49, %v2178_v49 }
 0x180   : > { %v2330_v25 = vadd.f32 %v2329_v1, %v2328_v40  ;;  %v2660_v27 = vpack.c.bf16 %v2176_v22, %v2176_v22  ;;  %v2280_v30 = vsel %vm409_vm8, %v2176_v22, 0.0  ;;  %2164 = vst.msk [vmem:[#allocation2 + $0x60] sm:$0xff] %vm409_vm8, %v2148_v10  ;;  %v2310_v33 = vmul.f32 %v2176_v22, %v2176_v22 }
 0x181   : > { %2259 = vst.msk [vmem:[%s3602_s4 + $0x28] sm:$0xf] %vm2248_vm9, %v2662_v21  ;;  %v2149_v34 = vadd.f32 %v2133_v18, %v2108_v53  ;;  %v2281_v36 = vadd.f32 %v2280_v30, %v2279_v29  ;;  %v2284_v50 = vsel %vm409_vm8, %v2178_v49, 0.0  ;;  %v2337_v57 = vsel %vm409_vm8, %v2312_v42, 0.0 }
 0x182   : > { %2167 = vst.msk [vmem:[#allocation2 + $0x78] sm:$0xff] %vm409_vm8, %v2151_v23  ;;  %v2332_v35 = vadd.f32 %v2331_v32, %v2330_v25  ;;  %v2333_v31 = vsel %vm409_vm8, %v2310_v33, 0.0  ;;  %v2179_v37 = vld [vmem:[#allocation2 + $0x58] sm:$0xff] }
 0x183   : > { %2257 = vst.msk [vmem:[%s3602_s4 + $0x20] sm:$0xf] %vm2248_vm9, %v2660_v27  ;;  %v2663_v39 = vpack.c.bf16 %v2179_v37, %v2179_v37  ;;  %v2313_v13 = vmul.f32 %v2179_v37, %v2179_v37  ;;  %v2286_v59 = vsel %vm409_vm8, %v2179_v37, 0.0 }
 0x184   : > { %2165 = vst.msk [vmem:[#allocation2 + $0x68] sm:$0xff] %vm409_vm8, %v2149_v34  ;;  %v2334_v38 = vadd.f32 %v2333_v31, %v2332_v35  ;;  %v2177_v14 = vld [vmem:[#allocation2 + $0x48] sm:$0xff] }
 0x185   : > { %v2661_v43 = vpack.c.bf16 %v2177_v14, %v2177_v14  ;;  %v2282_v44 = vsel %vm409_vm8, %v2177_v14, 0.0  ;;  %v2311_v45 = vmul.f32 %v2177_v14, %v2177_v14  ;;  %2260 = vst.msk [vmem:[%s3602_s4 + $0x2c] sm:$0xf] %vm2248_vm9, %v2663_v39  ;;  %v2339_v41 = vsel %vm409_vm8, %v2313_v13, 0.0 }
 0x186   : > { %v2182_v46 = vld [vmem:[#allocation2 + $0x70] sm:$0xff]  ;;  %v2283_v47 = vadd.f32 %v2282_v44, %v2281_v36 }
 0x187   : > { %v2666_v63 = vpack.c.bf16 %v2182_v46, %v2182_v46  ;;  %v2180_v48 = vld [vmem:[#allocation2 + $0x60] sm:$0xff]  ;;  %2258 = vst.msk [vmem:[%s3602_s4 + $0x24] sm:$0xf] %vm2248_vm9, %v2661_v43  ;;  %v2335_v51 = vsel %vm409_vm8, %v2311_v45, 0.0  ;;  %v2316_v7 = vmul.f32 %v2182_v46, %v2182_v46  ;;  %v2292_v11 = vsel %vm409_vm8, %v2182_v46, 0.0 }
 0x188   : > { %v2664_v52 = vpack.c.bf16 %v2180_v48, %v2180_v48  ;;  %v2285_v54 = vadd.f32 %v2284_v50, %v2283_v47  ;;  %v2336_v4 = vadd.f32 %v2335_v51, %v2334_v38  ;;  %v2314_v55 = vmul.f32 %v2180_v48, %v2180_v48 }
 0x189   : > { %v2183_v53 = vld [vmem:[#allocation2 + $0x78] sm:$0xff]  ;;  %2263 = vst.msk [vmem:[%s3602_s4 + $0x38] sm:$0xf] %vm2248_vm9, %v2666_v63  ;;  %v2288_v60 = vsel %vm409_vm8, %v2180_v48, 0.0  ;;  %v2345_v17 = vsel %vm409_vm8, %v2316_v7, 0.0 }
 0x18a   : > { %v2667_v56 = vpack.c.bf16 %v2183_v53, %v2183_v53  ;;  %2261 = vst.msk [vmem:[%s3602_s4 + $0x30] sm:$0xf] %vm2248_vm9, %v2664_v52  ;;  %v2338_v58 = vadd.f32 %v2337_v57, %v2336_v4  ;;  %v2287_v0 = vadd.f32 %v2286_v59, %v2285_v54  ;;  %v2341_v2 = vsel %vm409_vm8, %v2314_v55, 0.0 }
 0x18b   : > { %v2181_v61 = vld [vmem:[#allocation2 + $0x68] sm:$0xff]  ;;  %v2317_v15 = vmul.f32 %v2183_v53, %v2183_v53  ;;  %v2294_v28 = vsel %vm409_vm8, %v2183_v53, 0.0 }
 0x18c   : > { %2264 = vst.msk [vmem:[%s3602_s4 + $0x3c] sm:$0xf] %vm2248_vm9, %v2667_v56  ;;  %v2665_v26 = vpack.c.bf16 %v2181_v61, %v2181_v61  ;;  %v2290_v3 = vsel %vm409_vm8, %v2181_v61, 0.0  ;;  %v2315_v5 = vmul.f32 %v2181_v61, %v2181_v61  ;;  %v2289_v62 = vadd.f32 %v2288_v60, %v2287_v0 }
 0x18d   : > { %v2340_v6 = vadd.f32 %v2339_v41, %v2338_v58  ;;  %v2347_v10 = vsel %vm409_vm8, %v2317_v15, 0.0 }
 0x18e   : > { %2262 = vst.msk [vmem:[%s3602_s4 + $0x34] sm:$0xf] %vm2248_vm9, %v2665_v26  ;;  %v2343_v8 = vsel %vm409_vm8, %v2315_v5, 0.0  ;;  %v2291_v9 = vadd.f32 %v2290_v3, %v2289_v62 }
 0x18f   : > { %v2342_v12 = vadd.f32 %v2341_v2, %v2340_v6 }
 0x190   : > { %v2293_v16 = vadd.f32 %v2292_v11, %v2291_v9 }
 0x191   : > { %v2344_v24 = vadd.f32 %v2343_v8, %v2342_v12 }
 0x192   : > { %v2295_v40 = vadd.f32 %v2294_v28, %v2293_v16 }
 0x193   : > { %v2346_v49 = vadd.f32 %v2345_v17, %v2344_v24 }
 0x194   : > { %v2296_v19 = vrot.slane %v2295_v40, 4 }
 0x195   : > { %v2348_v1 = vadd.f32 %v2347_v10, %v2346_v49 }
 0x196   : > { %v2297_v20 = vadd.f32 %v2296_v19, %v2295_v40 }
 0x197   : > { %v2349_v21 = vrot.slane %v2348_v1, 4 }
 0x198   : > { %v2298_v22 = vrot.slane %v2297_v20, 2 }
 0x199   : > { %v2350_v23 = vadd.f32 %v2349_v21, %v2348_v1 }
 0x19a   : > { %v2299_v18 = vadd.f32 %v2298_v22, %v2297_v20 }
 0x19b   : > { %v2351_v25 = vrot.slane %v2350_v23, 2 }
 0x19c   : > { %v2300_v27 = vrot.slane %v2299_v18, 1 }
 0x19d   : > { %v2352_v29 = vadd.f32 %v2351_v25, %v2350_v23 }
 0x19e   : > { %v2301_v32 = vadd.f32 %v2300_v27, %v2299_v18 }
 0x19f   : > { %v2353_v30 = vrot.slane %v2352_v29, 1 }
 0x1a1   : > { %v2354_v33 = vadd.f32 %v2353_v30, %v2352_v29 }
 0x1a3   : > { %v2356_v34 = vsel %vm2355_vm10, %v2301_v32, %v2354_v33 }
 0x1a4   : > { %2358 = vst.msk [vmem:[%s216_s10] sm:$0x3] %vm2357_vm11, %v2356_v34 }
 0x1a5 PF: > { %s14_s16 = sadd.s32 1, %s3012_s16   ;;  %s3723_s12 = smov %s3004_s14 }
 0x1a6   : > { %p11_p8 = scmp.ge.s32.totalorder %s14_s16, 6   ;;  %s3724_s13 = smov %s3008_s15 }
 0x1a7   : > { %s3725_s14 = smov %s3728_s17  ;;  %s3726_s15 = smov %s3732_s18 }
 0x1a8   :  { %13 = sbr.rel (!%p11_p8) target bundleno = 3 (0x3), region = 79 }

</bundles_post_ra>
